<compile_context>
chip_gen: v7x
topology: tpu7x:2x2x1
jax: 0.10.0
libtpu: 0.0.40
codegen_flags: <defaults>
</compile_context>

<pallas_src>
import functools

import jax
import jax.numpy as jnp
from jax import lax
from jax.experimental import pallas as pl
from jax.experimental.pallas import tpu as pltpu

F32 = jnp.float32
BF16 = jnp.bfloat16


# ----------------------------------------------------------------------------
# In-kernel helpers (run inside the single fused pallas_call)
# ----------------------------------------------------------------------------
def _layernorm(x, g, b, eps=1e-5):
    mu = jnp.mean(x, axis=-1, keepdims=True)
    var = jnp.mean(jnp.square(x - mu), axis=-1, keepdims=True)
    return (x - mu) * lax.rsqrt(var + eps) * g + b


def _mha(x, w_qkv, b_qkv, w_out, b_out, bias, H, Dh):
    """Multi-head self-attention over one sequence.

    x: [S, D] f32, w_qkv: [D, 3D] bf16, w_out: [D, D] bf16,
    bias: additive mask broadcastable to [S, S].
    One K=D QKV matmul; per-head score/value matmuls (H unrolled at trace time);
    ONE output projection on the concatenated head outputs.
    """
    D = H * Dh
    scale = 1.0 / float(Dh) ** 0.5
    qkv = jnp.dot(x.astype(BF16), w_qkv, preferred_element_type=F32) + b_qkv   # [S, 3D]
    heads = []
    for hh in range(H):
        q = qkv[:, hh * Dh:(hh + 1) * Dh]
        k = qkv[:, D + hh * Dh:D + (hh + 1) * Dh]
        v = qkv[:, 2 * D + hh * Dh:2 * D + (hh + 1) * Dh]
        # contract last dims directly (no explicit k transpose)
        s = lax.dot_general(q.astype(BF16), k.astype(BF16),
                            dimension_numbers=(((1,), (1,)), ((), ())),
                            preferred_element_type=F32) * scale + bias          # [S, S]
        m = jnp.max(s, axis=-1, keepdims=True)
        p = jnp.exp(s - m)
        p = p * pl.reciprocal(jnp.sum(p, axis=-1, keepdims=True), approx=True)
        heads.append(jnp.dot(p.astype(BF16), v.astype(BF16),
                             preferred_element_type=F32))                       # [S, Dh]
    o = jnp.concatenate(heads, axis=-1)                                         # [S, D]
    return jnp.dot(o.astype(BF16), w_out, preferred_element_type=F32) + b_out


# ----------------------------------------------------------------------------
# The fused kernel: grid = (batch, layer); residual x lives in VMEM scratch
# ----------------------------------------------------------------------------
def _fused_kernel(x0_ref, pad_ref, vecs_ref, w_qkv_ref, w_out_ref, w_fc_ref,
                  w_fc2_ref, head_vecs_ref, dc_w_qkv_ref, dc_w_out_ref, lm_w_ref,
                  o_ref, x_scr, *, H):
    l = pl.program_id(1)
    S, D = x_scr.shape
    Dh = D // H
    FFN = w_fc_ref.shape[-1]

    # Layer 0 of each batch element: load the embedding block into the resident scratch.
    @pl.when(l == 0)
    def _():
        x_scr[...] = x0_ref[0]

    # Attention masks generated in-kernel (no O(S^2) bias streamed from HBM).
    keep_key = pad_ref[0] > 0.5                                        # [1, S] bool
    r = lax.broadcasted_iota(jnp.int32, (S, S), 0)
    c = lax.broadcasted_iota(jnp.int32, (S, S), 1)
    causal_bias = jnp.where((r >= c) & keep_key, 0.0, -1e9).astype(F32)  # [S, S]

    # Packed per-layer vectors (LN params + biases) from one [8, P] slab.
    vecs = vecs_ref[0]
    ln1_g = vecs[0:1, :D]; ln1_b = vecs[1:2, :D]
    ln2_g = vecs[2:3, :D]; ln2_b = vecs[3:4, :D]
    b_out = vecs[4:5, :D]; b_fc2 = vecs[5:6, :D]
    b_qkv = vecs[6:7, :3 * D]; b_fc = vecs[7:8, :FFN]

    # Transformer block: LN1 -> causal MHA -> residual -> LN2 -> MLP(gelu_new) -> residual.
    x = x_scr[...]
    h1 = _layernorm(x, ln1_g, ln1_b)
    x = x + _mha(h1, w_qkv_ref[0], b_qkv, w_out_ref[0], b_out, causal_bias, H, Dh)
    h2 = _layernorm(x, ln2_g, ln2_b)
    ff = jax.nn.gelu(
        jnp.dot(h2.astype(BF16), w_fc_ref[0], preferred_element_type=F32) + b_fc,
        approximate=True)
    x = x + jnp.dot(ff.astype(BF16), w_fc2_ref[0], preferred_element_type=F32) + b_fc2
    x_scr[...] = x

    # Last layer iteration: final LN + divergence/convergence attention + lm_head.
    @pl.when(l == pl.num_programs(1) - 1)
    def _():
        hv = head_vecs_ref[...]
        lnf_g = hv[0:1, :D]; lnf_b = hv[1:2, :D]
        dc_b_out = hv[2:3, :D]; dc_b_qkv = hv[3:4, :3 * D]
        hf = _layernorm(x, lnf_g, lnf_b)
        # DC module: MHA-style self-attention with key-padding mask only (no causal,
        # no residual with hf — matches the assumed reference module).
        pad_bias = jnp.where(keep_key, 0.0, -1e9).astype(F32)          # [1, S]
        dc = _mha(hf, dc_w_qkv_ref[...], dc_b_qkv, dc_w_out_ref[...], dc_b_out,
                  pad_bias, H, Dh)
        # lm_head: Linear(D, V, bias=False) -> lane-dense [S, V] logits block.
        o_ref[0] = jnp.dot(dc.astype(BF16), lm_w_ref[...],
                           preferred_element_type=F32).astype(o_ref.dtype)


# ----------------------------------------------------------------------------
# Wrapper: single pallas_call for the whole forward pass
# ----------------------------------------------------------------------------
def gpt2_with_dc_forward(params, input_ids, attention_mask, *, n_head):
    B, S = input_ids.shape
    D = params["wte"].shape[1]
    V = params["lm_w"].shape[1]
    L, _, P = params["vecs"].shape
    FFN = params["w_fc"].shape[-1]

    # Embedding gather stays in plain JAX glue.
    x0 = (params["wte"][input_ids] + params["wpe"][jnp.arange(S)][None, :, :]).astype(F32)
    pad = attention_mask.astype(F32).reshape(B, 1, S)

    grid_spec = pltpu.PrefetchScalarGridSpec(
        num_scalar_prefetch=0,
        grid=(B, L),
        in_specs=[
            pl.BlockSpec((1, S, D), lambda b, l: (b, 0, 0)),        # embeddings x0
            pl.BlockSpec((1, 1, S), lambda b, l: (b, 0, 0)),        # key-padding vector
            pl.BlockSpec((1, 8, P), lambda b, l: (l, 0, 0)),        # packed per-layer vecs
            pl.BlockSpec((1, D, 3 * D), lambda b, l: (l, 0, 0)),    # W_qkv (bf16)
            pl.BlockSpec((1, D, D), lambda b, l: (l, 0, 0)),        # W_out (bf16)
            pl.BlockSpec((1, D, FFN), lambda b, l: (l, 0, 0)),      # W_fc (bf16)
            pl.BlockSpec((1, FFN, D), lambda b, l: (l, 0, 0)),      # W_fc2 (bf16)
            pl.BlockSpec((8, P), lambda b, l: (0, 0)),              # head packed vecs
            pl.BlockSpec((D, 3 * D), lambda b, l: (0, 0)),          # DC W_qkv (bf16)
            pl.BlockSpec((D, D), lambda b, l: (0, 0)),              # DC W_out (bf16)
            pl.BlockSpec((D, V), lambda b, l: (0, 0)),              # lm_head W (bf16)
        ],
        out_specs=pl.BlockSpec((1, S, V), lambda b, l: (b, 0, 0)),
        scratch_shapes=[pltpu.VMEM((S, D), F32)],                   # resident residual x
    )
    return pl.pallas_call(
        functools.partial(_fused_kernel, H=n_head),
        out_shape=jax.ShapeDtypeStruct((B, S, V), F32),
        grid_spec=grid_spec,
        compiler_params=pltpu.CompilerParams(
            dimension_semantics=("parallel", "arbitrary")),
    )(x0, pad, params["vecs"], params["w_qkv"], params["w_out"], params["w_fc"],
      params["w_fc2"], params["head_vecs"], params["dc_w_qkv"], params["dc_w_out"],
      params["lm_w"])


# ----------------------------------------------------------------------------
# Deterministic synthetic parameter init (stacked / packed / bf16 layouts)
# ----------------------------------------------------------------------------
def init_params(key, *, vocab, D, H, n_layer, ffn, max_pos):
    del H  # head count only affects the kernel, not the weight shapes here
    P = ((max(D, 3 * D, ffn) + 127) // 128) * 128
    ks = jax.random.split(key, 16)

    def nrm(k, shape, scale=0.02):
        return (scale * jax.random.normal(k, shape)).astype(F32)

    # Packed per-layer vector slab: rows = [ln1_g, ln1_b, ln2_g, ln2_b,
    #                                       b_out, b_fc2, b_qkv, b_fc], zero padded to P.
    vecs = jnp.zeros((n_layer, 8, P), F32)
    vecs = vecs.at[:, 0, :D].set(1.0)                                   # ln1 gamma
    vecs = vecs.at[:, 2, :D].set(1.0)                                   # ln2 gamma
    vecs = vecs.at[:, 4, :D].set(nrm(ks[9], (n_layer, D)))              # attn proj bias
    vecs = vecs.at[:, 5, :D].set(nrm(ks[10], (n_layer, D)))             # fc2 bias
    vecs = vecs.at[:, 6, :3 * D].set(nrm(ks[11], (n_layer, 3 * D)))     # qkv bias
    vecs = vecs.at[:, 7, :ffn].set(nrm(ks[12], (n_layer, ffn)))         # fc bias

    # Head slab: rows = [lnf_g, lnf_b, dc_out_bias, dc_qkv_bias, 0...].
    head_vecs = jnp.zeros((8, P), F32)
    head_vecs = head_vecs.at[0, :D].set(1.0)                            # final LN gamma
    head_vecs = head_vecs.at[2, :D].set(nrm(ks[13], (D,)))              # DC out-proj bias
    head_vecs = head_vecs.at[3, :3 * D].set(nrm(ks[14], (3 * D,)))      # DC in-proj bias

    # TODO(synk): pretrained 'gpt2-large' weights are not loadable here; synthetic weights
    # at reduced size. PyTorch nn.MultiheadAttention stores in_proj as [3D, D]; real
    # weights would need a transpose / head permutation to land in this [D, 3D] layout.
    return {
        "wte": nrm(ks[0], (vocab, D)),
        "wpe": nrm(ks[1], (max_pos, D)),
        "vecs": vecs,
        "head_vecs": head_vecs,
        # Matrix weights pre-cast to bf16 once: halves DMA bytes, no in-kernel weight cast.
        "w_qkv": nrm(ks[2], (n_layer, D, 3 * D)).astype(BF16),
        "w_out": nrm(ks[3], (n_layer, D, D)).astype(BF16),
        "w_fc": nrm(ks[4], (n_layer, D, ffn)).astype(BF16),
        "w_fc2": nrm(ks[5], (n_layer, ffn, D)).astype(BF16),
        "dc_w_qkv": nrm(ks[6], (D, 3 * D)).astype(BF16),
        "dc_w_out": nrm(ks[7], (D, D)).astype(BF16),
        "lm_w": nrm(ks[8], (D, vocab)).astype(BF16),
    }


if __name__ == "__main__":
    VOCAB, D, H, N_LAYER, FFN, MAX_POS = 256, 128, 4, 2, 512, 16
    B, S = 2, 8

    key = jax.random.PRNGKey(0)
    k_params, k_ids = jax.random.split(key, 2)

    params = init_params(k_params, vocab=VOCAB, D=D, H=H, n_layer=N_LAYER,
                         ffn=FFN, max_pos=MAX_POS)

    input_ids = jax.random.randint(k_ids, (B, S), 0, VOCAB, dtype=jnp.int32)
    # attention_mask: last two positions of batch element 1 padded out
    attention_mask = jnp.ones((B, S), jnp.int32).at[1, S - 2:].set(0)

    forward = jax.jit(functools.partial(gpt2_with_dc_forward, n_head=H))
    logits = jax.block_until_ready(forward(params, input_ids, attention_mask))

    assert logits.shape == (B, S, VOCAB), logits.shape
    assert bool(jnp.all(jnp.isfinite(logits)))
    print("KERNEL_OK")
</pallas_src>

<mosaic_0001>
module attributes {stable_mosaic.version = 11 : i64} {
  func.func @_fused_kernel(%arg0: i32, %arg1: i32, %arg2: memref<1x8x128xf32, #tpu.memory_space<vmem>>, %arg3: memref<1x1x8xf32, #tpu.memory_space<vmem>>, %arg4: memref<1x8x512xf32, #tpu.memory_space<vmem>>, %arg5: memref<1x128x384xbf16, #tpu.memory_space<vmem>>, %arg6: memref<1x128x128xbf16, #tpu.memory_space<vmem>>, %arg7: memref<1x128x512xbf16, #tpu.memory_space<vmem>>, %arg8: memref<1x512x128xbf16, #tpu.memory_space<vmem>>, %arg9: memref<8x512xf32, #tpu.memory_space<vmem>>, %arg10: memref<128x384xbf16, #tpu.memory_space<vmem>>, %arg11: memref<128x128xbf16, #tpu.memory_space<vmem>>, %arg12: memref<128x256xbf16, #tpu.memory_space<vmem>>, %arg13: memref<1x8x256xf32, #tpu.memory_space<vmem>>, %arg14: memref<8x128xf32, #tpu.memory_space<vmem>>) attributes {dimension_semantics = [#tpu.dimension_semantics<parallel>, #tpu.dimension_semantics<arbitrary>], iteration_bounds = array<i64: 2, 2>, scalar_prefetch = 0 : i64, scratch_operands = 1 : i64, tpu.core_type = #tpu.core_type<tc>, window_params = [{transform_indices = @transform_0, window_bounds = array<i64: 1, 8, 128>}, {transform_indices = @transform_1, window_bounds = array<i64: 1, 1, 8>}, {transform_indices = @transform_2, window_bounds = array<i64: 1, 8, 512>}, {transform_indices = @transform_3, window_bounds = array<i64: 1, 128, 384>}, {transform_indices = @transform_4, window_bounds = array<i64: 1, 128, 128>}, {transform_indices = @transform_5, window_bounds = array<i64: 1, 128, 512>}, {transform_indices = @transform_6, window_bounds = array<i64: 1, 512, 128>}, {pipeline_mode = #tpu.pipeline_mode<synchronous>, transform_indices = @transform_7, window_bounds = array<i64: 8, 512>}, {pipeline_mode = #tpu.pipeline_mode<synchronous>, transform_indices = @transform_8, window_bounds = array<i64: 128, 384>}, {pipeline_mode = #tpu.pipeline_mode<synchronous>, transform_indices = @transform_9, window_bounds = array<i64: 128, 128>}, {pipeline_mode = #tpu.pipeline_mode<synchronous>, transform_indices = @transform_10, window_bounds = array<i64: 128, 256>}, {transform_indices = @transform_11, window_bounds = array<i64: 1, 8, 256>}]} {
    %c0_i32 = arith.constant 0 : i32
    %0 = arith.cmpi eq, %arg1, %c0_i32 : i32
    %1 = arith.extui %0 : i1 to i32
    %c0_i32_0 = arith.constant 0 : i32
    %2 = arith.cmpi ne, %1, %c0_i32_0 : i32
    scf.if %2 {
      %c0_63 = arith.constant 0 : index
      %c0_64 = arith.constant 0 : index
      %c0_65 = arith.constant 0 : index
      %202 = vector.load %arg2[%c0_63, %c0_64, %c0_65] : memref<1x8x128xf32, #tpu.memory_space<vmem>>, vector<1x8x128xf32>
      %203 = vector.shape_cast %202 : vector<1x8x128xf32> to vector<8x128xf32>
      %c0_66 = arith.constant 0 : index
      %c0_67 = arith.constant 0 : index
      %204 = vector.load %arg14[%c0_66, %c0_67] : memref<8x128xf32, #tpu.memory_space<vmem>>, vector<8x128xf32>
      tpu.vector_store %arg14[%c0_66, %c0_67], %203 {strides = array<i32>} : memref<8x128xf32, #tpu.memory_space<vmem>>, vector<8x128xf32>,
    } else {
    }
    %c0 = arith.constant 0 : index
    %c0_1 = arith.constant 0 : index
    %c0_2 = arith.constant 0 : index
    %3 = vector.load %arg3[%c0, %c0_1, %c0_2] : memref<1x1x8xf32, #tpu.memory_space<vmem>>, vector<1x1x8xf32>
    %4 = vector.shape_cast %3 : vector<1x1x8xf32> to vector<1x8xf32>
    %cst = arith.constant 5.000000e-01 : f32
    %5 = vector.broadcast %cst : f32 to vector<1x8xf32>
    %6 = arith.cmpf ogt, %4, %5 : vector<1x8xf32>
    %7 = tpu.iota {dimensions = array<i32: 0>} : vector<8x8xi32>
    %8 = tpu.iota {dimensions = array<i32: 1>} : vector<8x8xi32>
    %9 = arith.cmpi sge, %7, %8 : vector<8x8xi32>
    %10 = vector.broadcast %6 : vector<1x8xi1> to vector<8x8xi1>
    %11 = arith.andi %9, %10 : vector<8x8xi1>
    %cst_3 = arith.constant 0.000000e+00 : f32
    %cst_4 = arith.constant -1.000000e+09 : f32
    %12 = vector.broadcast %cst_3 : f32 to vector<8x8xf32>
    %13 = vector.broadcast %cst_4 : f32 to vector<8x8xf32>
    %14 = arith.select %11, %12, %13 : vector<8x8xi1>, vector<8x8xf32>
    %c0_5 = arith.constant 0 : index
    %c0_6 = arith.constant 0 : index
    %c0_7 = arith.constant 0 : index
    %15 = vector.load %arg4[%c0_5, %c0_6, %c0_7] : memref<1x8x512xf32, #tpu.memory_space<vmem>>, vector<1x8x512xf32>
    %16 = vector.shape_cast %15 : vector<1x8x512xf32> to vector<8x512xf32>
    %17 = vector.extract_strided_slice %16 {offsets = [0, 0], sizes = [1, 128], strides = [1, 1]} : vector<8x512xf32> to vector<1x128xf32>
    %18 = vector.extract_strided_slice %16 {offsets = [1, 0], sizes = [1, 128], strides = [1, 1]} : vector<8x512xf32> to vector<1x128xf32>
    %19 = vector.extract_strided_slice %16 {offsets = [2, 0], sizes = [1, 128], strides = [1, 1]} : vector<8x512xf32> to vector<1x128xf32>
    %20 = vector.extract_strided_slice %16 {offsets = [3, 0], sizes = [1, 128], strides = [1, 1]} : vector<8x512xf32> to vector<1x128xf32>
    %21 = vector.extract_strided_slice %16 {offsets = [4, 0], sizes = [1, 128], strides = [1, 1]} : vector<8x512xf32> to vector<1x128xf32>
    %22 = vector.extract_strided_slice %16 {offsets = [5, 0], sizes = [1, 128], strides = [1, 1]} : vector<8x512xf32> to vector<1x128xf32>
    %23 = vector.extract_strided_slice %16 {offsets = [6, 0], sizes = [1, 384], strides = [1, 1]} : vector<8x512xf32> to vector<1x384xf32>
    %24 = vector.extract_strided_slice %16 {offsets = [7, 0], sizes = [1, 512], strides = [1, 1]} : vector<8x512xf32> to vector<1x512xf32>
    %c0_8 = arith.constant 0 : index
    %c0_9 = arith.constant 0 : index
    %25 = vector.load %arg14[%c0_8, %c0_9] : memref<8x128xf32, #tpu.memory_space<vmem>>, vector<8x128xf32>
    %cst_10 = arith.constant dense<0.000000e+00> : vector<8xf32>
    %26 = vector.multi_reduction <add>, %25, %cst_10 [1] : vector<8x128xf32> to vector<8xf32>
    %27 = vector.shape_cast %26 : vector<8xf32> to vector<8x1xf32>
    %cst_11 = arith.constant 1.280000e+02 : f32
    %28 = vector.broadcast %cst_11 : f32 to vector<8x1xf32>
    %29 = arith.divf %27, %28 : vector<8x1xf32>
    %30 = vector.broadcast %29 : vector<8x1xf32> to vector<8x128xf32>
    %31 = arith.subf %25, %30 : vector<8x128xf32>
    %32 = arith.mulf %31, %31 : vector<8x128xf32>
    %cst_12 = arith.constant dense<0.000000e+00> : vector<8xf32>
    %33 = vector.multi_reduction <add>, %32, %cst_12 [1] : vector<8x128xf32> to vector<8xf32>
    %34 = vector.shape_cast %33 : vector<8xf32> to vector<8x1xf32>
    %cst_13 = arith.constant 1.280000e+02 : f32
    %35 = vector.broadcast %cst_13 : f32 to vector<8x1xf32>
    %36 = arith.divf %34, %35 : vector<8x1xf32>
    %37 = vector.broadcast %29 : vector<8x1xf32> to vector<8x128xf32>
    %38 = arith.subf %25, %37 : vector<8x128xf32>
    %cst_14 = arith.constant 9.99999974E-6 : f32
    %39 = vector.broadcast %cst_14 : f32 to vector<8x1xf32>
    %40 = arith.addf %36, %39 : vector<8x1xf32>
    %41 = math.rsqrt %40 : vector<8x1xf32>
    %42 = vector.broadcast %41 : vector<8x1xf32> to vector<8x128xf32>
    %43 = arith.mulf %38, %42 : vector<8x128xf32>
    %44 = vector.broadcast %17 : vector<1x128xf32> to vector<8x128xf32>
    %45 = arith.mulf %43, %44 : vector<8x128xf32>
    %46 = vector.broadcast %18 : vector<1x128xf32> to vector<8x128xf32>
    %47 = arith.addf %45, %46 : vector<8x128xf32>
    %c0_15 = arith.constant 0 : index
    %c0_16 = arith.constant 0 : index
    %c0_17 = arith.constant 0 : index
    %48 = vector.load %arg5[%c0_15, %c0_16, %c0_17] : memref<1x128x384xbf16, #tpu.memory_space<vmem>>, vector<1x128x384xbf16>
    %49 = vector.shape_cast %48 : vector<1x128x384xbf16> to vector<128x384xbf16>
    %c0_18 = arith.constant 0 : index
    %c0_19 = arith.constant 0 : index
    %c0_20 = arith.constant 0 : index
    %50 = vector.load %arg6[%c0_18, %c0_19, %c0_20] : memref<1x128x128xbf16, #tpu.memory_space<vmem>>, vector<1x128x128xbf16>
    %51 = vector.shape_cast %50 : vector<1x128x128xbf16> to vector<128x128xbf16>
    %52 = arith.truncf %47 : vector<8x128xf32> to vector<8x128xbf16>
    %cst_21 = arith.constant dense<0.000000e+00> : vector<8x384xf32>
    %53 = tpu.matmul %52, %49, %cst_21 {dimension_numbers = #tpu.dot_dimension_numbers<[1], [0], [0], [1], [0, 0, 1, 1], [], []>} : vector<8x128xbf16>, vector<128x384xbf16>, vector<8x384xf32> -> vector<8x384xf32>
    %54 = vector.broadcast %23 : vector<1x384xf32> to vector<8x384xf32>
    %55 = arith.addf %53, %54 : vector<8x384xf32>
    %56 = vector.extract_strided_slice %55 {offsets = [0, 0], sizes = [8, 32], strides = [1, 1]} : vector<8x384xf32> to vector<8x32xf32>
    %57 = vector.extract_strided_slice %55 {offsets = [0, 128], sizes = [8, 32], strides = [1, 1]} : vector<8x384xf32> to vector<8x32xf32>
    %58 = vector.extract_strided_slice %55 {offsets = [0, 256], sizes = [8, 32], strides = [1, 1]} : vector<8x384xf32> to vector<8x32xf32>
    %59 = arith.truncf %56 : vector<8x32xf32> to vector<8x32xbf16>
    %60 = arith.truncf %57 : vector<8x32xf32> to vector<8x32xbf16>
    %cst_22 = arith.constant dense<0.000000e+00> : vector<8x8xf32>
    %61 = tpu.matmul %59, %60, %cst_22 {dimension_numbers = #tpu.dot_dimension_numbers<[1], [1], [0], [0], [0, 0, 1, 0], [], []>} : vector<8x32xbf16>, vector<8x32xbf16>, vector<8x8xf32> -> vector<8x8xf32>
    %cst_23 = arith.constant 0.176776692 : f32
    %62 = vector.broadcast %cst_23 : f32 to vector<8x8xf32>
    %63 = arith.mulf %61, %62 : vector<8x8xf32>
    %64 = arith.addf %63, %14 : vector<8x8xf32>
    %cst_24 = arith.constant dense<0xFF800000> : vector<8xf32>
    %65 = vector.multi_reduction <maximumf>, %64, %cst_24 [1] : vector<8x8xf32> to vector<8xf32>
    %66 = vector.shape_cast %65 : vector<8xf32> to vector<8x1xf32>
    %67 = vector.broadcast %66 : vector<8x1xf32> to vector<8x8xf32>
    %68 = arith.subf %64, %67 : vector<8x8xf32>
    %69 = math.exp %68 : vector<8x8xf32>
    %cst_25 = arith.constant dense<0.000000e+00> : vector<8xf32>
    %70 = vector.multi_reduction <add>, %69, %cst_25 [1] : vector<8x8xf32> to vector<8xf32>
    %71 = vector.shape_cast %70 : vector<8xf32> to vector<8x1xf32>
    %72 = tpu.reciprocal %71 {approx = true} : vector<8x1xf32> -> vector<8x1xf32>
    %73 = vector.broadcast %72 : vector<8x1xf32> to vector<8x8xf32>
    %74 = arith.mulf %69, %73 : vector<8x8xf32>
    %75 = arith.truncf %74 : vector<8x8xf32> to vector<8x8xbf16>
    %76 = arith.truncf %58 : vector<8x32xf32> to vector<8x32xbf16>
    %cst_26 = arith.constant dense<0.000000e+00> : vector<8x32xf32>
    %77 = tpu.matmul %75, %76, %cst_26 {dimension_numbers = #tpu.dot_dimension_numbers<[1], [0], [0], [1], [0, 0, 1, 1], [], []>} : vector<8x8xbf16>, vector<8x32xbf16>, vector<8x32xf32> -> vector<8x32xf32>
    %78 = vector.extract_strided_slice %55 {offsets = [0, 32], sizes = [8, 32], strides = [1, 1]} : vector<8x384xf32> to vector<8x32xf32>
    %79 = vector.extract_strided_slice %55 {offsets = [0, 160], sizes = [8, 32], strides = [1, 1]} : vector<8x384xf32> to vector<8x32xf32>
    %80 = vector.extract_strided_slice %55 {offsets = [0, 288], sizes = [8, 32], strides = [1, 1]} : vector<8x384xf32> to vector<8x32xf32>
    %81 = arith.truncf %78 : vector<8x32xf32> to vector<8x32xbf16>
    %82 = arith.truncf %79 : vector<8x32xf32> to vector<8x32xbf16>
    %cst_27 = arith.constant dense<0.000000e+00> : vector<8x8xf32>
    %83 = tpu.matmul %81, %82, %cst_27 {dimension_numbers = #tpu.dot_dimension_numbers<[1], [1], [0], [0], [0, 0, 1, 0], [], []>} : vector<8x32xbf16>, vector<8x32xbf16>, vector<8x8xf32> -> vector<8x8xf32>
    %cst_28 = arith.constant 0.176776692 : f32
    %84 = vector.broadcast %cst_28 : f32 to vector<8x8xf32>
    %85 = arith.mulf %83, %84 : vector<8x8xf32>
    %86 = arith.addf %85, %14 : vector<8x8xf32>
    %cst_29 = arith.constant dense<0xFF800000> : vector<8xf32>
    %87 = vector.multi_reduction <maximumf>, %86, %cst_29 [1] : vector<8x8xf32> to vector<8xf32>
    %88 = vector.shape_cast %87 : vector<8xf32> to vector<8x1xf32>
    %89 = vector.broadcast %88 : vector<8x1xf32> to vector<8x8xf32>
    %90 = arith.subf %86, %89 : vector<8x8xf32>
    %91 = math.exp %90 : vector<8x8xf32>
    %cst_30 = arith.constant dense<0.000000e+00> : vector<8xf32>
    %92 = vector.multi_reduction <add>, %91, %cst_30 [1] : vector<8x8xf32> to vector<8xf32>
    %93 = vector.shape_cast %92 : vector<8xf32> to vector<8x1xf32>
    %94 = tpu.reciprocal %93 {approx = true} : vector<8x1xf32> -> vector<8x1xf32>
    %95 = vector.broadcast %94 : vector<8x1xf32> to vector<8x8xf32>
    %96 = arith.mulf %91, %95 : vector<8x8xf32>
    %97 = arith.truncf %96 : vector<8x8xf32> to vector<8x8xbf16>
    %98 = arith.truncf %80 : vector<8x32xf32> to vector<8x32xbf16>
    %cst_31 = arith.constant dense<0.000000e+00> : vector<8x32xf32>
    %99 = tpu.matmul %97, %98, %cst_31 {dimension_numbers = #tpu.dot_dimension_numbers<[1], [0], [0], [1], [0, 0, 1, 1], [], []>} : vector<8x8xbf16>, vector<8x32xbf16>, vector<8x32xf32> -> vector<8x32xf32>
    %100 = vector.extract_strided_slice %55 {offsets = [0, 64], sizes = [8, 32], strides = [1, 1]} : vector<8x384xf32> to vector<8x32xf32>
    %101 = vector.extract_strided_slice %55 {offsets = [0, 192], sizes = [8, 32], strides = [1, 1]} : vector<8x384xf32> to vector<8x32xf32>
    %102 = vector.extract_strided_slice %55 {offsets = [0, 320], sizes = [8, 32], strides = [1, 1]} : vector<8x384xf32> to vector<8x32xf32>
    %103 = arith.truncf %100 : vector<8x32xf32> to vector<8x32xbf16>
    %104 = arith.truncf %101 : vector<8x32xf32> to vector<8x32xbf16>
    %cst_32 = arith.constant dense<0.000000e+00> : vector<8x8xf32>
    %105 = tpu.matmul %103, %104, %cst_32 {dimension_numbers = #tpu.dot_dimension_numbers<[1], [1], [0], [0], [0, 0, 1, 0], [], []>} : vector<8x32xbf16>, vector<8x32xbf16>, vector<8x8xf32> -> vector<8x8xf32>
    %cst_33 = arith.constant 0.176776692 : f32
    %106 = vector.broadcast %cst_33 : f32 to vector<8x8xf32>
    %107 = arith.mulf %105, %106 : vector<8x8xf32>
    %108 = arith.addf %107, %14 : vector<8x8xf32>
    %cst_34 = arith.constant dense<0xFF800000> : vector<8xf32>
    %109 = vector.multi_reduction <maximumf>, %108, %cst_34 [1] : vector<8x8xf32> to vector<8xf32>
    %110 = vector.shape_cast %109 : vector<8xf32> to vector<8x1xf32>
    %111 = vector.broadcast %110 : vector<8x1xf32> to vector<8x8xf32>
    %112 = arith.subf %108, %111 : vector<8x8xf32>
    %113 = math.exp %112 : vector<8x8xf32>
    %cst_35 = arith.constant dense<0.000000e+00> : vector<8xf32>
    %114 = vector.multi_reduction <add>, %113, %cst_35 [1] : vector<8x8xf32> to vector<8xf32>
    %115 = vector.shape_cast %114 : vector<8xf32> to vector<8x1xf32>
    %116 = tpu.reciprocal %115 {approx = true} : vector<8x1xf32> -> vector<8x1xf32>
    %117 = vector.broadcast %116 : vector<8x1xf32> to vector<8x8xf32>
    %118 = arith.mulf %113, %117 : vector<8x8xf32>
    %119 = arith.truncf %118 : vector<8x8xf32> to vector<8x8xbf16>
    %120 = arith.truncf %102 : vector<8x32xf32> to vector<8x32xbf16>
    %cst_36 = arith.constant dense<0.000000e+00> : vector<8x32xf32>
    %121 = tpu.matmul %119, %120, %cst_36 {dimension_numbers = #tpu.dot_dimension_numbers<[1], [0], [0], [1], [0, 0, 1, 1], [], []>} : vector<8x8xbf16>, vector<8x32xbf16>, vector<8x32xf32> -> vector<8x32xf32>
    %122 = vector.extract_strided_slice %55 {offsets = [0, 96], sizes = [8, 32], strides = [1, 1]} : vector<8x384xf32> to vector<8x32xf32>
    %123 = vector.extract_strided_slice %55 {offsets = [0, 224], sizes = [8, 32], strides = [1, 1]} : vector<8x384xf32> to vector<8x32xf32>
    %124 = vector.extract_strided_slice %55 {offsets = [0, 352], sizes = [8, 32], strides = [1, 1]} : vector<8x384xf32> to vector<8x32xf32>
    %125 = arith.truncf %122 : vector<8x32xf32> to vector<8x32xbf16>
    %126 = arith.truncf %123 : vector<8x32xf32> to vector<8x32xbf16>
    %cst_37 = arith.constant dense<0.000000e+00> : vector<8x8xf32>
    %127 = tpu.matmul %125, %126, %cst_37 {dimension_numbers = #tpu.dot_dimension_numbers<[1], [1], [0], [0], [0, 0, 1, 0], [], []>} : vector<8x32xbf16>, vector<8x32xbf16>, vector<8x8xf32> -> vector<8x8xf32>
    %cst_38 = arith.constant 0.176776692 : f32
    %128 = vector.broadcast %cst_38 : f32 to vector<8x8xf32>
    %129 = arith.mulf %127, %128 : vector<8x8xf32>
    %130 = arith.addf %129, %14 : vector<8x8xf32>
    %cst_39 = arith.constant dense<0xFF800000> : vector<8xf32>
    %131 = vector.multi_reduction <maximumf>, %130, %cst_39 [1] : vector<8x8xf32> to vector<8xf32>
    %132 = vector.shape_cast %131 : vector<8xf32> to vector<8x1xf32>
    %133 = vector.broadcast %132 : vector<8x1xf32> to vector<8x8xf32>
    %134 = arith.subf %130, %133 : vector<8x8xf32>
    %135 = math.exp %134 : vector<8x8xf32>
    %cst_40 = arith.constant dense<0.000000e+00> : vector<8xf32>
    %136 = vector.multi_reduction <add>, %135, %cst_40 [1] : vector<8x8xf32> to vector<8xf32>
    %137 = vector.shape_cast %136 : vector<8xf32> to vector<8x1xf32>
    %138 = tpu.reciprocal %137 {approx = true} : vector<8x1xf32> -> vector<8x1xf32>
    %139 = vector.broadcast %138 : vector<8x1xf32> to vector<8x8xf32>
    %140 = arith.mulf %135, %139 : vector<8x8xf32>
    %141 = arith.truncf %140 : vector<8x8xf32> to vector<8x8xbf16>
    %142 = arith.truncf %124 : vector<8x32xf32> to vector<8x32xbf16>
    %cst_41 = arith.constant dense<0.000000e+00> : vector<8x32xf32>
    %143 = tpu.matmul %141, %142, %cst_41 {dimension_numbers = #tpu.dot_dimension_numbers<[1], [0], [0], [1], [0, 0, 1, 1], [], []>} : vector<8x8xbf16>, vector<8x32xbf16>, vector<8x32xf32> -> vector<8x32xf32>
    %144 = tpu.concatenate %77, %99, %121, %143 in 1 : vector<8x32xf32>, vector<8x32xf32>, vector<8x32xf32>, vector<8x32xf32> -> vector<8x128xf32>
    %145 = arith.truncf %144 : vector<8x128xf32> to vector<8x128xbf16>
    %cst_42 = arith.constant dense<0.000000e+00> : vector<8x128xf32>
    %146 = tpu.matmul %145, %51, %cst_42 {dimension_numbers = #tpu.dot_dimension_numbers<[1], [0], [0], [1], [0, 0, 1, 1], [], []>} : vector<8x128xbf16>, vector<128x128xbf16>, vector<8x128xf32> -> vector<8x128xf32>
    %147 = vector.broadcast %21 : vector<1x128xf32> to vector<8x128xf32>
    %148 = arith.addf %146, %147 : vector<8x128xf32>
    %149 = arith.addf %25, %148 : vector<8x128xf32>
    %cst_43 = arith.constant dense<0.000000e+00> : vector<8xf32>
    %150 = vector.multi_reduction <add>, %149, %cst_43 [1] : vector<8x128xf32> to vector<8xf32>
    %151 = vector.shape_cast %150 : vector<8xf32> to vector<8x1xf32>
    %cst_44 = arith.constant 1.280000e+02 : f32
    %152 = vector.broadcast %cst_44 : f32 to vector<8x1xf32>
    %153 = arith.divf %151, %152 : vector<8x1xf32>
    %154 = vector.broadcast %153 : vector<8x1xf32> to vector<8x128xf32>
    %155 = arith.subf %149, %154 : vector<8x128xf32>
    %156 = arith.mulf %155, %155 : vector<8x128xf32>
    %cst_45 = arith.constant dense<0.000000e+00> : vector<8xf32>
    %157 = vector.multi_reduction <add>, %156, %cst_45 [1] : vector<8x128xf32> to vector<8xf32>
    %158 = vector.shape_cast %157 : vector<8xf32> to vector<8x1xf32>
    %cst_46 = arith.constant 1.280000e+02 : f32
    %159 = vector.broadcast %cst_46 : f32 to vector<8x1xf32>
    %160 = arith.divf %158, %159 : vector<8x1xf32>
    %161 = vector.broadcast %153 : vector<8x1xf32> to vector<8x128xf32>
    %162 = arith.subf %149, %161 : vector<8x128xf32>
    %cst_47 = arith.constant 9.99999974E-6 : f32
    %163 = vector.broadcast %cst_47 : f32 to vector<8x1xf32>
    %164 = arith.addf %160, %163 : vector<8x1xf32>
    %165 = math.rsqrt %164 : vector<8x1xf32>
    %166 = vector.broadcast %165 : vector<8x1xf32> to vector<8x128xf32>
    %167 = arith.mulf %162, %166 : vector<8x128xf32>
    %168 = vector.broadcast %19 : vector<1x128xf32> to vector<8x128xf32>
    %169 = arith.mulf %167, %168 : vector<8x128xf32>
    %170 = vector.broadcast %20 : vector<1x128xf32> to vector<8x128xf32>
    %171 = arith.addf %169, %170 : vector<8x128xf32>
    %172 = arith.truncf %171 : vector<8x128xf32> to vector<8x128xbf16>
    %c0_48 = arith.constant 0 : index
    %c0_49 = arith.constant 0 : index
    %c0_50 = arith.constant 0 : index
    %173 = vector.load %arg7[%c0_48, %c0_49, %c0_50] : memref<1x128x512xbf16, #tpu.memory_space<vmem>>, vector<1x128x512xbf16>
    %174 = vector.shape_cast %173 : vector<1x128x512xbf16> to vector<128x512xbf16>
    %cst_51 = arith.constant dense<0.000000e+00> : vector<8x512xf32>
    %175 = tpu.matmul %172, %174, %cst_51 {dimension_numbers = #tpu.dot_dimension_numbers<[1], [0], [0], [1], [0, 0, 1, 1], [], []>} : vector<8x128xbf16>, vector<128x512xbf16>, vector<8x512xf32> -> vector<8x512xf32>
    %176 = vector.broadcast %24 : vector<1x512xf32> to vector<8x512xf32>
    %177 = arith.addf %175, %176 : vector<8x512xf32>
    %178 = arith.mulf %177, %177 : vector<8x512xf32>
    %179 = arith.mulf %177, %178 : vector<8x512xf32>
    %cst_52 = arith.constant 4.471500e-02 : f32
    %180 = vector.broadcast %cst_52 : f32 to vector<8x512xf32>
    %181 = arith.mulf %180, %179 : vector<8x512xf32>
    %182 = arith.addf %177, %181 : vector<8x512xf32>
    %cst_53 = arith.constant 0.797884583 : f32
    %183 = vector.broadcast %cst_53 : f32 to vector<8x512xf32>
    %184 = arith.mulf %183, %182 : vector<8x512xf32>
    %185 = math.tanh %184 : vector<8x512xf32>
    %cst_54 = arith.constant 1.000000e+00 : f32
    %186 = vector.broadcast %cst_54 : f32 to vector<8x512xf32>
    %187 = arith.addf %186, %185 : vector<8x512xf32>
    %cst_55 = arith.constant 5.000000e-01 : f32
    %188 = vector.broadcast %cst_55 : f32 to vector<8x512xf32>
    %189 = arith.mulf %188, %187 : vector<8x512xf32>
    %190 = arith.mulf %177, %189 : vector<8x512xf32>
    %191 = arith.truncf %190 : vector<8x512xf32> to vector<8x512xbf16>
    %c0_56 = arith.constant 0 : index
    %c0_57 = arith.constant 0 : index
    %c0_58 = arith.constant 0 : index
    %192 = vector.load %arg8[%c0_56, %c0_57, %c0_58] : memref<1x512x128xbf16, #tpu.memory_space<vmem>>, vector<1x512x128xbf16>
    %193 = vector.shape_cast %192 : vector<1x512x128xbf16> to vector<512x128xbf16>
    %cst_59 = arith.constant dense<0.000000e+00> : vector<8x128xf32>
    %194 = tpu.matmul %191, %193, %cst_59 {dimension_numbers = #tpu.dot_dimension_numbers<[1], [0], [0], [1], [0, 0, 1, 1], [], []>} : vector<8x512xbf16>, vector<512x128xbf16>, vector<8x128xf32> -> vector<8x128xf32>
    %195 = arith.addf %149, %194 : vector<8x128xf32>
    %196 = vector.broadcast %22 : vector<1x128xf32> to vector<8x128xf32>
    %197 = arith.addf %195, %196 : vector<8x128xf32>
    %c0_60 = arith.constant 0 : index
    %c0_61 = arith.constant 0 : index
    %198 = vector.load %arg14[%c0_60, %c0_61] : memref<8x128xf32, #tpu.memory_space<vmem>>, vector<8x128xf32>
    tpu.vector_store %arg14[%c0_60, %c0_61], %197 {strides = array<i32>} : memref<8x128xf32, #tpu.memory_space<vmem>>, vector<8x128xf32>,
    %c1_i32 = arith.constant 1 : i32
    %199 = arith.cmpi eq, %arg1, %c1_i32 : i32
    %200 = arith.extui %199 : i1 to i32
    %c0_i32_62 = arith.constant 0 : i32
    %201 = arith.cmpi ne, %200, %c0_i32_62 : i32
    scf.if %201 {
      %c0_63 = arith.constant 0 : index
      %c0_64 = arith.constant 0 : index
      %202 = vector.load %arg9[%c0_63, %c0_64] : memref<8x512xf32, #tpu.memory_space<vmem>>, vector<8x512xf32>
      %203 = vector.extract_strided_slice %202 {offsets = [0, 0], sizes = [1, 128], strides = [1, 1]} : vector<8x512xf32> to vector<1x128xf32>
      %204 = vector.extract_strided_slice %202 {offsets = [1, 0], sizes = [1, 128], strides = [1, 1]} : vector<8x512xf32> to vector<1x128xf32>
      %205 = vector.extract_strided_slice %202 {offsets = [2, 0], sizes = [1, 128], strides = [1, 1]} : vector<8x512xf32> to vector<1x128xf32>
      %206 = vector.extract_strided_slice %202 {offsets = [3, 0], sizes = [1, 384], strides = [1, 1]} : vector<8x512xf32> to vector<1x384xf32>
      %cst_65 = arith.constant dense<0.000000e+00> : vector<8xf32>
      %207 = vector.multi_reduction <add>, %197, %cst_65 [1] : vector<8x128xf32> to vector<8xf32>
      %208 = vector.shape_cast %207 : vector<8xf32> to vector<8x1xf32>
      %cst_66 = arith.constant 1.280000e+02 : f32
      %209 = vector.broadcast %cst_66 : f32 to vector<8x1xf32>
      %210 = arith.divf %208, %209 : vector<8x1xf32>
      %211 = vector.broadcast %210 : vector<8x1xf32> to vector<8x128xf32>
      %212 = arith.subf %197, %211 : vector<8x128xf32>
      %213 = arith.mulf %212, %212 : vector<8x128xf32>
      %cst_67 = arith.constant dense<0.000000e+00> : vector<8xf32>
      %214 = vector.multi_reduction <add>, %213, %cst_67 [1] : vector<8x128xf32> to vector<8xf32>
      %215 = vector.shape_cast %214 : vector<8xf32> to vector<8x1xf32>
      %cst_68 = arith.constant 1.280000e+02 : f32
      %216 = vector.broadcast %cst_68 : f32 to vector<8x1xf32>
      %217 = arith.divf %215, %216 : vector<8x1xf32>
      %218 = vector.broadcast %210 : vector<8x1xf32> to vector<8x128xf32>
      %219 = arith.subf %197, %218 : vector<8x128xf32>
      %cst_69 = arith.constant 9.99999974E-6 : f32
      %220 = vector.broadcast %cst_69 : f32 to vector<8x1xf32>
      %221 = arith.addf %217, %220 : vector<8x1xf32>
      %222 = math.rsqrt %221 : vector<8x1xf32>
      %223 = vector.broadcast %222 : vector<8x1xf32> to vector<8x128xf32>
      %224 = arith.mulf %219, %223 : vector<8x128xf32>
      %225 = vector.broadcast %203 : vector<1x128xf32> to vector<8x128xf32>
      %226 = arith.mulf %224, %225 : vector<8x128xf32>
      %227 = vector.broadcast %204 : vector<1x128xf32> to vector<8x128xf32>
      %228 = arith.addf %226, %227 : vector<8x128xf32>
      %cst_70 = arith.constant 0.000000e+00 : f32
      %cst_71 = arith.constant -1.000000e+09 : f32
      %229 = vector.broadcast %cst_70 : f32 to vector<1x8xf32>
      %230 = vector.broadcast %cst_71 : f32 to vector<1x8xf32>
      %231 = arith.select %6, %229, %230 : vector<1x8xi1>, vector<1x8xf32>
      %c0_72 = arith.constant 0 : index
      %c0_73 = arith.constant 0 : index
      %232 = vector.load %arg10[%c0_72, %c0_73] : memref<128x384xbf16, #tpu.memory_space<vmem>>, vector<128x384xbf16>
      %c0_74 = arith.constant 0 : index
      %c0_75 = arith.constant 0 : index
      %233 = vector.load %arg11[%c0_74, %c0_75] : memref<128x128xbf16, #tpu.memory_space<vmem>>, vector<128x128xbf16>
      %234 = arith.truncf %228 : vector<8x128xf32> to vector<8x128xbf16>
      %cst_76 = arith.constant dense<0.000000e+00> : vector<8x384xf32>
      %235 = tpu.matmul %234, %232, %cst_76 {dimension_numbers = #tpu.dot_dimension_numbers<[1], [0], [0], [1], [0, 0, 1, 1], [], []>} : vector<8x128xbf16>, vector<128x384xbf16>, vector<8x384xf32> -> vector<8x384xf32>
      %236 = vector.broadcast %206 : vector<1x384xf32> to vector<8x384xf32>
      %237 = arith.addf %235, %236 : vector<8x384xf32>
      %238 = vector.extract_strided_slice %237 {offsets = [0, 0], sizes = [8, 32], strides = [1, 1]} : vector<8x384xf32> to vector<8x32xf32>
      %239 = vector.extract_strided_slice %237 {offsets = [0, 128], sizes = [8, 32], strides = [1, 1]} : vector<8x384xf32> to vector<8x32xf32>
      %240 = vector.extract_strided_slice %237 {offsets = [0, 256], sizes = [8, 32], strides = [1, 1]} : vector<8x384xf32> to vector<8x32xf32>
      %241 = arith.truncf %238 : vector<8x32xf32> to vector<8x32xbf16>
      %242 = arith.truncf %239 : vector<8x32xf32> to vector<8x32xbf16>
      %cst_77 = arith.constant dense<0.000000e+00> : vector<8x8xf32>
      %243 = tpu.matmul %241, %242, %cst_77 {dimension_numbers = #tpu.dot_dimension_numbers<[1], [1], [0], [0], [0, 0, 1, 0], [], []>} : vector<8x32xbf16>, vector<8x32xbf16>, vector<8x8xf32> -> vector<8x8xf32>
      %cst_78 = arith.constant 0.176776692 : f32
      %244 = vector.broadcast %cst_78 : f32 to vector<8x8xf32>
      %245 = arith.mulf %243, %244 : vector<8x8xf32>
      %246 = vector.broadcast %231 : vector<1x8xf32> to vector<8x8xf32>
      %247 = arith.addf %245, %246 : vector<8x8xf32>
      %cst_79 = arith.constant dense<0xFF800000> : vector<8xf32>
      %248 = vector.multi_reduction <maximumf>, %247, %cst_79 [1] : vector<8x8xf32> to vector<8xf32>
      %249 = vector.shape_cast %248 : vector<8xf32> to vector<8x1xf32>
      %250 = vector.broadcast %249 : vector<8x1xf32> to vector<8x8xf32>
      %251 = arith.subf %247, %250 : vector<8x8xf32>
      %252 = math.exp %251 : vector<8x8xf32>
      %cst_80 = arith.constant dense<0.000000e+00> : vector<8xf32>
      %253 = vector.multi_reduction <add>, %252, %cst_80 [1] : vector<8x8xf32> to vector<8xf32>
      %254 = vector.shape_cast %253 : vector<8xf32> to vector<8x1xf32>
      %255 = tpu.reciprocal %254 {approx = true} : vector<8x1xf32> -> vector<8x1xf32>
      %256 = vector.broadcast %255 : vector<8x1xf32> to vector<8x8xf32>
      %257 = arith.mulf %252, %256 : vector<8x8xf32>
      %258 = arith.truncf %257 : vector<8x8xf32> to vector<8x8xbf16>
      %259 = arith.truncf %240 : vector<8x32xf32> to vector<8x32xbf16>
      %cst_81 = arith.constant dense<0.000000e+00> : vector<8x32xf32>
      %260 = tpu.matmul %258, %259, %cst_81 {dimension_numbers = #tpu.dot_dimension_numbers<[1], [0], [0], [1], [0, 0, 1, 1], [], []>} : vector<8x8xbf16>, vector<8x32xbf16>, vector<8x32xf32> -> vector<8x32xf32>
      %261 = vector.extract_strided_slice %237 {offsets = [0, 32], sizes = [8, 32], strides = [1, 1]} : vector<8x384xf32> to vector<8x32xf32>
      %262 = vector.extract_strided_slice %237 {offsets = [0, 160], sizes = [8, 32], strides = [1, 1]} : vector<8x384xf32> to vector<8x32xf32>
      %263 = vector.extract_strided_slice %237 {offsets = [0, 288], sizes = [8, 32], strides = [1, 1]} : vector<8x384xf32> to vector<8x32xf32>
      %264 = arith.truncf %261 : vector<8x32xf32> to vector<8x32xbf16>
      %265 = arith.truncf %262 : vector<8x32xf32> to vector<8x32xbf16>
      %cst_82 = arith.constant dense<0.000000e+00> : vector<8x8xf32>
      %266 = tpu.matmul %264, %265, %cst_82 {dimension_numbers = #tpu.dot_dimension_numbers<[1], [1], [0], [0], [0, 0, 1, 0], [], []>} : vector<8x32xbf16>, vector<8x32xbf16>, vector<8x8xf32> -> vector<8x8xf32>
      %cst_83 = arith.constant 0.176776692 : f32
      %267 = vector.broadcast %cst_83 : f32 to vector<8x8xf32>
      %268 = arith.mulf %266, %267 : vector<8x8xf32>
      %269 = vector.broadcast %231 : vector<1x8xf32> to vector<8x8xf32>
      %270 = arith.addf %268, %269 : vector<8x8xf32>
      %cst_84 = arith.constant dense<0xFF800000> : vector<8xf32>
      %271 = vector.multi_reduction <maximumf>, %270, %cst_84 [1] : vector<8x8xf32> to vector<8xf32>
      %272 = vector.shape_cast %271 : vector<8xf32> to vector<8x1xf32>
      %273 = vector.broadcast %272 : vector<8x1xf32> to vector<8x8xf32>
      %274 = arith.subf %270, %273 : vector<8x8xf32>
      %275 = math.exp %274 : vector<8x8xf32>
      %cst_85 = arith.constant dense<0.000000e+00> : vector<8xf32>
      %276 = vector.multi_reduction <add>, %275, %cst_85 [1] : vector<8x8xf32> to vector<8xf32>
      %277 = vector.shape_cast %276 : vector<8xf32> to vector<8x1xf32>
      %278 = tpu.reciprocal %277 {approx = true} : vector<8x1xf32> -> vector<8x1xf32>
      %279 = vector.broadcast %278 : vector<8x1xf32> to vector<8x8xf32>
      %280 = arith.mulf %275, %279 : vector<8x8xf32>
      %281 = arith.truncf %280 : vector<8x8xf32> to vector<8x8xbf16>
      %282 = arith.truncf %263 : vector<8x32xf32> to vector<8x32xbf16>
      %cst_86 = arith.constant dense<0.000000e+00> : vector<8x32xf32>
      %283 = tpu.matmul %281, %282, %cst_86 {dimension_numbers = #tpu.dot_dimension_numbers<[1], [0], [0], [1], [0, 0, 1, 1], [], []>} : vector<8x8xbf16>, vector<8x32xbf16>, vector<8x32xf32> -> vector<8x32xf32>
      %284 = vector.extract_strided_slice %237 {offsets = [0, 64], sizes = [8, 32], strides = [1, 1]} : vector<8x384xf32> to vector<8x32xf32>
      %285 = vector.extract_strided_slice %237 {offsets = [0, 192], sizes = [8, 32], strides = [1, 1]} : vector<8x384xf32> to vector<8x32xf32>
      %286 = vector.extract_strided_slice %237 {offsets = [0, 320], sizes = [8, 32], strides = [1, 1]} : vector<8x384xf32> to vector<8x32xf32>
      %287 = arith.truncf %284 : vector<8x32xf32> to vector<8x32xbf16>
      %288 = arith.truncf %285 : vector<8x32xf32> to vector<8x32xbf16>
      %cst_87 = arith.constant dense<0.000000e+00> : vector<8x8xf32>
      %289 = tpu.matmul %287, %288, %cst_87 {dimension_numbers = #tpu.dot_dimension_numbers<[1], [1], [0], [0], [0, 0, 1, 0], [], []>} : vector<8x32xbf16>, vector<8x32xbf16>, vector<8x8xf32> -> vector<8x8xf32>
      %cst_88 = arith.constant 0.176776692 : f32
      %290 = vector.broadcast %cst_88 : f32 to vector<8x8xf32>
      %291 = arith.mulf %289, %290 : vector<8x8xf32>
      %292 = vector.broadcast %231 : vector<1x8xf32> to vector<8x8xf32>
      %293 = arith.addf %291, %292 : vector<8x8xf32>
      %cst_89 = arith.constant dense<0xFF800000> : vector<8xf32>
      %294 = vector.multi_reduction <maximumf>, %293, %cst_89 [1] : vector<8x8xf32> to vector<8xf32>
      %295 = vector.shape_cast %294 : vector<8xf32> to vector<8x1xf32>
      %296 = vector.broadcast %295 : vector<8x1xf32> to vector<8x8xf32>
      %297 = arith.subf %293, %296 : vector<8x8xf32>
      %298 = math.exp %297 : vector<8x8xf32>
      %cst_90 = arith.constant dense<0.000000e+00> : vector<8xf32>
      %299 = vector.multi_reduction <add>, %298, %cst_90 [1] : vector<8x8xf32> to vector<8xf32>
      %300 = vector.shape_cast %299 : vector<8xf32> to vector<8x1xf32>
      %301 = tpu.reciprocal %300 {approx = true} : vector<8x1xf32> -> vector<8x1xf32>
      %302 = vector.broadcast %301 : vector<8x1xf32> to vector<8x8xf32>
      %303 = arith.mulf %298, %302 : vector<8x8xf32>
      %304 = arith.truncf %303 : vector<8x8xf32> to vector<8x8xbf16>
      %305 = arith.truncf %286 : vector<8x32xf32> to vector<8x32xbf16>
      %cst_91 = arith.constant dense<0.000000e+00> : vector<8x32xf32>
      %306 = tpu.matmul %304, %305, %cst_91 {dimension_numbers = #tpu.dot_dimension_numbers<[1], [0], [0], [1], [0, 0, 1, 1], [], []>} : vector<8x8xbf16>, vector<8x32xbf16>, vector<8x32xf32> -> vector<8x32xf32>
      %307 = vector.extract_strided_slice %237 {offsets = [0, 96], sizes = [8, 32], strides = [1, 1]} : vector<8x384xf32> to vector<8x32xf32>
      %308 = vector.extract_strided_slice %237 {offsets = [0, 224], sizes = [8, 32], strides = [1, 1]} : vector<8x384xf32> to vector<8x32xf32>
      %309 = vector.extract_strided_slice %237 {offsets = [0, 352], sizes = [8, 32], strides = [1, 1]} : vector<8x384xf32> to vector<8x32xf32>
      %310 = arith.truncf %307 : vector<8x32xf32> to vector<8x32xbf16>
      %311 = arith.truncf %308 : vector<8x32xf32> to vector<8x32xbf16>
      %cst_92 = arith.constant dense<0.000000e+00> : vector<8x8xf32>
      %312 = tpu.matmul %310, %311, %cst_92 {dimension_numbers = #tpu.dot_dimension_numbers<[1], [1], [0], [0], [0, 0, 1, 0], [], []>} : vector<8x32xbf16>, vector<8x32xbf16>, vector<8x8xf32> -> vector<8x8xf32>
      %cst_93 = arith.constant 0.176776692 : f32
      %313 = vector.broadcast %cst_93 : f32 to vector<8x8xf32>
      %314 = arith.mulf %312, %313 : vector<8x8xf32>
      %315 = vector.broadcast %231 : vector<1x8xf32> to vector<8x8xf32>
      %316 = arith.addf %314, %315 : vector<8x8xf32>
      %cst_94 = arith.constant dense<0xFF800000> : vector<8xf32>
      %317 = vector.multi_reduction <maximumf>, %316, %cst_94 [1] : vector<8x8xf32> to vector<8xf32>
      %318 = vector.shape_cast %317 : vector<8xf32> to vector<8x1xf32>
      %319 = vector.broadcast %318 : vector<8x1xf32> to vector<8x8xf32>
      %320 = arith.subf %316, %319 : vector<8x8xf32>
      %321 = math.exp %320 : vector<8x8xf32>
      %cst_95 = arith.constant dense<0.000000e+00> : vector<8xf32>
      %322 = vector.multi_reduction <add>, %321, %cst_95 [1] : vector<8x8xf32> to vector<8xf32>
      %323 = vector.shape_cast %322 : vector<8xf32> to vector<8x1xf32>
      %324 = tpu.reciprocal %323 {approx = true} : vector<8x1xf32> -> vector<8x1xf32>
      %325 = vector.broadcast %324 : vector<8x1xf32> to vector<8x8xf32>
      %326 = arith.mulf %321, %325 : vector<8x8xf32>
      %327 = arith.truncf %326 : vector<8x8xf32> to vector<8x8xbf16>
      %328 = arith.truncf %309 : vector<8x32xf32> to vector<8x32xbf16>
      %cst_96 = arith.constant dense<0.000000e+00> : vector<8x32xf32>
      %329 = tpu.matmul %327, %328, %cst_96 {dimension_numbers = #tpu.dot_dimension_numbers<[1], [0], [0], [1], [0, 0, 1, 1], [], []>} : vector<8x8xbf16>, vector<8x32xbf16>, vector<8x32xf32> -> vector<8x32xf32>
      %330 = tpu.concatenate %260, %283, %306, %329 in 1 : vector<8x32xf32>, vector<8x32xf32>, vector<8x32xf32>, vector<8x32xf32> -> vector<8x128xf32>
      %331 = arith.truncf %330 : vector<8x128xf32> to vector<8x128xbf16>
      %cst_97 = arith.constant dense<0.000000e+00> : vector<8x128xf32>
      %332 = tpu.matmul %331, %233, %cst_97 {dimension_numbers = #tpu.dot_dimension_numbers<[1], [0], [0], [1], [0, 0, 1, 1], [], []>} : vector<8x128xbf16>, vector<128x128xbf16>, vector<8x128xf32> -> vector<8x128xf32>
      %333 = vector.broadcast %205 : vector<1x128xf32> to vector<8x128xf32>
      %334 = arith.addf %332, %333 : vector<8x128xf32>
      %335 = arith.truncf %334 : vector<8x128xf32> to vector<8x128xbf16>
      %c0_98 = arith.constant 0 : index
      %c0_99 = arith.constant 0 : index
      %336 = vector.load %arg12[%c0_98, %c0_99] : memref<128x256xbf16, #tpu.memory_space<vmem>>, vector<128x256xbf16>
      %cst_100 = arith.constant dense<0.000000e+00> : vector<8x256xf32>
      %337 = tpu.matmul %335, %336, %cst_100 {dimension_numbers = #tpu.dot_dimension_numbers<[1], [0], [0], [1], [0, 0, 1, 1], [], []>} : vector<8x128xbf16>, vector<128x256xbf16>, vector<8x256xf32> -> vector<8x256xf32>
      %c0_101 = arith.constant 0 : index
      %c0_102 = arith.constant 0 : index
      %c0_103 = arith.constant 0 : index
      %338 = vector.load %arg13[%c0_101, %c0_102, %c0_103] : memref<1x8x256xf32, #tpu.memory_space<vmem>>, vector<1x8x256xf32>
      %339 = vector.shape_cast %338 : vector<1x8x256xf32> to vector<8x256xf32>
      %340 = vector.shape_cast %337 : vector<8x256xf32> to vector<1x8x256xf32>
      tpu.vector_store %arg13[%c0_101, %c0_102, %c0_103], %340 {strides = array<i32>} : memref<1x8x256xf32, #tpu.memory_space<vmem>>, vector<1x8x256xf32>,
    } else {
    }
    return
  }
  func.func @transform_0(%arg0: i32, %arg1: i32) -> (i32, i32, i32) {
    %c0_i32 = arith.constant 0 : i32
    %c0_i32_0 = arith.constant 0 : i32
    %c0_i32_1 = arith.constant 0 : i32
    return %arg0, %c0_i32, %c0_i32_0 : i32, i32, i32
  }
  func.func @transform_1(%arg0: i32, %arg1: i32) -> (i32, i32, i32) {
    %c0_i32 = arith.constant 0 : i32
    %c0_i32_0 = arith.constant 0 : i32
    %c0_i32_1 = arith.constant 0 : i32
    return %arg0, %c0_i32, %c0_i32_0 : i32, i32, i32
  }
  func.func @transform_2(%arg0: i32, %arg1: i32) -> (i32, i32, i32) {
    %c0_i32 = arith.constant 0 : i32
    %c0_i32_0 = arith.constant 0 : i32
    %c0_i32_1 = arith.constant 0 : i32
    return %arg1, %c0_i32, %c0_i32_0 : i32, i32, i32
  }
  func.func @transform_3(%arg0: i32, %arg1: i32) -> (i32, i32, i32) {
    %c0_i32 = arith.constant 0 : i32
    %c0_i32_0 = arith.constant 0 : i32
    %c0_i32_1 = arith.constant 0 : i32
    return %arg1, %c0_i32, %c0_i32_0 : i32, i32, i32
  }
  func.func @transform_4(%arg0: i32, %arg1: i32) -> (i32, i32, i32) {
    %c0_i32 = arith.constant 0 : i32
    %c0_i32_0 = arith.constant 0 : i32
    %c0_i32_1 = arith.constant 0 : i32
    return %arg1, %c0_i32, %c0_i32_0 : i32, i32, i32
  }
  func.func @transform_5(%arg0: i32, %arg1: i32) -> (i32, i32, i32) {
    %c0_i32 = arith.constant 0 : i32
    %c0_i32_0 = arith.constant 0 : i32
    %c0_i32_1 = arith.constant 0 : i32
    return %arg1, %c0_i32, %c0_i32_0 : i32, i32, i32
  }
  func.func @transform_6(%arg0: i32, %arg1: i32) -> (i32, i32, i32) {
    %c0_i32 = arith.constant 0 : i32
    %c0_i32_0 = arith.constant 0 : i32
    %c0_i32_1 = arith.constant 0 : i32
    return %arg1, %c0_i32, %c0_i32_0 : i32, i32, i32
  }
  func.func @transform_7(%arg0: i32, %arg1: i32) -> (i32, i32) {
    %c0_i32 = arith.constant 0 : i32
    %c0_i32_0 = arith.constant 0 : i32
    %c0_i32_1 = arith.constant 0 : i32
    return %c0_i32, %c0_i32_0 : i32, i32
  }
  func.func @transform_8(%arg0: i32, %arg1: i32) -> (i32, i32) {
    %c0_i32 = arith.constant 0 : i32
    %c0_i32_0 = arith.constant 0 : i32
    %c0_i32_1 = arith.constant 0 : i32
    return %c0_i32, %c0_i32_0 : i32, i32
  }
  func.func @transform_9(%arg0: i32, %arg1: i32) -> (i32, i32) {
    %c0_i32 = arith.constant 0 : i32
    %c0_i32_0 = arith.constant 0 : i32
    %c0_i32_1 = arith.constant 0 : i32
    return %c0_i32, %c0_i32_0 : i32, i32
  }
  func.func @transform_10(%arg0: i32, %arg1: i32) -> (i32, i32) {
    %c0_i32 = arith.constant 0 : i32
    %c0_i32_0 = arith.constant 0 : i32
    %c0_i32_1 = arith.constant 0 : i32
    return %c0_i32, %c0_i32_0 : i32, i32
  }
  func.func @transform_11(%arg0: i32, %arg1: i32) -> (i32, i32, i32) {
    %c0_i32 = arith.constant 0 : i32
    %c0_i32_0 = arith.constant 0 : i32
    %c0_i32_1 = arith.constant 0 : i32
    return %arg0, %c0_i32, %c0_i32_0 : i32, i32, i32
  }
}

</mosaic_0001>

<bundles_post_ra>
// kernel: gpt2_with_dc_forward.1
= control target key start
LH: loop header
LB: loop body
LE: loop exit
PB: predicated region body
PF: predicated region fallthrough
CT: control target
= control target key end

     0   :  { %s5674_s0 = inlined_call_operand.vmem [shape: f32[2,8,128], index: 0, kind: input, shape index: {}]   ;;  %s5675_s1 = inlined_call_operand.vmem [shape: f32[2,1,8], index: 1, kind: input, shape index: {}]   ;;  %s5676_s2 = inlined_call_operand.vmem [shape: f32[2,8,512], index: 2, kind: input, shape index: {}]   ;;  %s5677_s3 = inlined_call_operand.hbm [shape: bf16[2,128,384], index: 3, kind: input, shape index: {}]   ;;  %s5678_s4 = inlined_call_operand.hbm [shape: bf16[2,128,128], index: 4, kind: input, shape index: {}]   ;;  %s5679_s5 = inlined_call_operand.hbm [shape: bf16[2,128,512], index: 5, kind: input, shape index: {}]   ;;  %s5680_s6 = inlined_call_operand.hbm [shape: bf16[2,512,128], index: 6, kind: input, shape index: {}]   ;;  %s5681_s7 = inlined_call_operand.hbm [shape: f32[8,512], index: 7, kind: input, shape index: {}]   ;;  %s5682_s8 = inlined_call_operand.vmem [shape: bf16[128,384], index: 8, kind: input, shape index: {}]   ;;  %s5683_s9 = inlined_call_operand.hbm [shape: bf16[128,128], index: 9, kind: input, shape index: {}]   ;;  %s5684_s10 = inlined_call_operand.hbm [shape: bf16[128,256], index: 10, kind: input, shape index: {}]   ;;  %s5685_s11 = inlined_call_operand.hbm [shape: f32[2,8,256], index: 11, kind: output, shape index: {}]  }
   0x1   :  { %5716 = sst [smem:[#allocation35_spill]] %s5674_s0 }
   0x2   :  { %5717 = sst [smem:[#allocation36_spill]] %s5675_s1 }
   0x3   :  { %5718 = sst [smem:[#allocation37_spill]] %s5676_s2 }
   0x4   :  { %5719 = sst [smem:[#allocation38_spill]] %s5678_s4 }
   0x5   :  { %5720 = sst [smem:[#allocation39_spill]] %s5681_s7 }
   0x6   :  { %5721 = sst [smem:[#allocation40_spill]] %s5682_s8 }
   0x7   :  { %5722 = sst [smem:[#allocation41_spill]] %s5683_s9 }
   0x8   :  { %5723 = sst [smem:[#allocation42_spill]] %s5685_s11 }
   0x9   :  { %16 = vsyncpa [#allocation4], 0 }
   0xa   :  { %18 = vsyncpa [#allocation4 + $0x1], 0 }
   0xb   :  { %19 = vsyncpa [#allocation7], 0 }
   0xc   :  { %21 = vsyncpa [#allocation7 + $0x1], 0 }
   0xd   :  { %22 = vsyncpa [#allocation10], 0 }
   0xe   :  { %24 = vsyncpa [#allocation10 + $0x1], 0 }
   0xf   :  { %25 = vsyncpa [#allocation13], 0 }
  0x10   :  { %26 = vsyncpa [#allocation5], 0 }
  0x11   :  { %28 = vsyncpa [#allocation5 + $0x1], 0  ;;  %s4751_s17 = smov 0   ;;  %s4753_s18 = smov 0  }
  0x12   :  { %s4755_s19 = smov 0   ;;  %s4757_s20 = smov 0  }
  0x13   :  { %s4759_s21 = smov 0   ;;  %s4761_s22 = smov 0  }
  0x14   :  { %s4763_s23 = smov 0   ;;  %s4765_s24 = smov 0  }
  0x15   :  { %s4767_s25 = smov 0   ;;  %s4769_s26 = smov 0  }
  0x16   :  { %s4771_s27 = smov 0  }
  0x17 LB: > { %5724 = sst [smem:[#allocation22_spill]] %s4619_s17  ;;  %s4805_s28 = sadd.s32 4294967295, %s4659_s27   ;;  %s4659_s27 = sphi %s4771_s27, %s34_s27   ;;  %s4655_s26 = sphi %s4769_s26, %s5791_s26   ;;  %s4651_s25 = sphi %s4767_s25, %s5797_s25   ;;  %s4647_s24 = sphi %s4765_s24, %s5789_s24   ;;  %s4643_s23 = sphi %s4763_s23, %s5796_s23   ;;  %s4639_s22 = sphi %s4761_s22, %s5788_s22   ;;  %s4635_s21 = sphi %s4759_s21, %s5795_s21   ;;  %s4631_s20 = sphi %s4757_s20, %s5794_s20   ;;  %s4627_s19 = sphi %s4755_s19, %s5793_s19   ;;  %s4623_s18 = sphi %s4753_s18, %s5792_s18   ;;  %s4619_s17 = sphi %s4751_s17, %s5785_s17  }
  0x18   : > { %5725 = sst [smem:[#allocation23_spill]] %s4623_s18  ;;  %s3427_s29 = sadd.s32 4294967294, %s4659_s27  }
  0x19   : > { %5726 = sst [smem:[#allocation24_spill]] %s4639_s22  ;;  %p138_p0 = scmp.ne.s32.totalorder %s4639_s22, %s4635_s21 }
  0x1a   : > { %5727 = sst [smem:[#allocation25_spill]] %s4643_s23  ;;  %p139_p1 = scmp.eq.s32.totalorder %s4659_s27, 0 }
  0x1b   : > { %5728 = sst [smem:[#allocation26_spill]] %s4647_s24  ;;  %p144_p2 = scmp.ne.s32.totalorder %s4635_s21, %s4631_s20 }
  0x1c   : > { %5729 = sst [smem:[#allocation27_spill]] %s4655_s26  ;;  %p5692_p3 = scmp.eq.s32.totalorder %s4805_s28, 0 }
  0x1d   : > { %5730 = sst [smem:[#allocation28_spill]] %s4805_s28  ;;  %p4815_p4 = por %p139_p1, %p138_p0 }
  0x1e   : > { %p329_p5 = scmp.ne.s32.totalorder %s4627_s19, %s4623_s18  ;;  %p4823_p6 = por %p5692_p3, %p144_p2 }
  0x1f   : > { %s5731_s13 = scalar_select %p4815_p4, 1, 0 }
  0x20   : > { %s5732_s14 = scalar_select %p4823_p6, 1, 0 }
  0x21   : > { %p330_p7 = scmp.eq.s32.totalorder %s4805_s28, 3  ;;  %p335_p8 = scmp.ne.s32.totalorder %s4623_s18, %s4619_s17 }
  0x22   : > { %p336_p9 = scmp.eq.s32.totalorder %s3427_s29, 3  ;;  %p3428_p11 = scmp.ge.s32.totalorder %s4659_s27, 1 }
  0x23   : > { %p4830_p10 = por %p330_p7, %p329_p5  ;;  %p343_p13 = scmp.lt.s32.totalorder %s4659_s27, 5 }
  0x24   : > { %p4835_p12 = por %p336_p9, %p335_p8  ;;  %s4661_s12 = smov [#allocation11]  }
  0x25   : > { %s5733_s15 = scalar_select %p4830_p10, 1, 0 }
  0x26   : > { %s5735_s16 = scalar_select %p4835_p12, 1, 0 }
  0x27   : > { %5734 = sst [smem:[#allocation29_spill]] %s5733_s15  ;;  %p4840_p0 = pnand %p3428_p11, %p343_p13 }
  0x28   : > { %5736 = sst [smem:[#allocation30_spill]] %s5735_s16  ;;  %s356_s30 = sshll.u32 %s4661_s12, 4  ;;  %s357_s30 = int_to_ptr.vmem [resolvable:$true] %s356_s30 }
  0x29   : > { %s5737_s20 = scalar_select %p4840_p0, 1, 0 }
  0x2a   : > { %p3939_p1 = pneg %p4840_p0  ;;  %s4662_s29 = smov [#allocation12]  }
  0x2b   : > { %s369_s17 = sshll.u32 %s4662_s29, 4  ;;  %s5739_s7 = sld [smem:[#allocation39_spill]]  ;;  %s4852_s17 = int_to_ptr.vmem [resolvable:$true] %s369_s17 }
  0x2c   : > { %p4848_p2 = pnand %p3939_p1, %p5692_p3 }
  0x2e   : > { %s5738_s11 = scalar_select %p4848_p2, 1, 0 }
  0x2f   : > { %p4862_p7 = pneg %p4848_p2 }
  0x31   : > { %s4317_s8 = scalar_lea.hbm %s5739_s7, 512 }
  0x32   : > { %p4318_p5 = scmp.ne.s32.totalorder %s5739_s7, %s4317_s8  ;;  %p4324_p11 = scmp.lt.u32.totalorder %s4317_s8, %s5739_s7 }
  0x33   : > { %s5740_s12 = scalar_select %p4862_p7, 1, 0 }
  0x34   : > { %p4320_p8 = pnand %p4862_p7, %p4318_p5 }
  0x36   : > { %p4321_p9 = pneg %p4320_p8 }
  0x38   : > { %p4326_p13 = pnand %p4324_p11, %p4321_p9 }
  0x3a   : > { %4329 = shalt.err (!%p4326_p13)
}
  0x3b   : > { %s4330_s15 = scalar_lea.vmem %s357_s30, 512  ;;  %p4338_p10 = scmp.lt.s32.totalorder %s357_s30, %s357_s30 }
  0x3c   : > { %p4331_p1 = scmp.ne.s32.totalorder %s357_s30, %s4330_s15  ;;  %p4339_p6 = scmp.lt.s32.totalorder %s4330_s15, %s4330_s15 }
  0x3e   : > { %p4333_p3 = pnand %p4331_p1, %p4862_p7  ;;  %p4340_p0 = por %p4339_p6, %p4338_p10 }
  0x40   : > { %p4334_p12 = pneg %p4333_p3 }
  0x42   : > { %p4341_p4 = pnand %p4340_p0, %p4334_p12 }
  0x44   : > { %4344 = shalt.err (!%p4341_p4)
}
  0x45   : > { %3942 = dma.hbm_to_vmem [thread:$0]  (!%p4848_p2), %s5739_s7, 512, %s357_s30, [#allocation10]  }
  0x46   : > { %s5741_s9 = sld [smem:[#allocation41_spill]] }
  0x4c   : > { %s4345_s16 = scalar_lea.hbm %s5741_s9, 1024 }
  0x4d   : > { %p4346_p3 = scmp.ne.s32.totalorder %s5741_s9, %s4345_s16  ;;  %p4352_p4 = scmp.lt.u32.totalorder %s4345_s16, %s5741_s9 }
  0x4f   : > { %p4348_p5 = pnand %p4346_p3, %p4862_p7 }
  0x51   : > { %p4349_p6 = pneg %p4348_p5 }
  0x53   : > { %p4354_p10 = pnand %p4352_p4, %p4349_p6 }
  0x55   : > { %4357 = shalt.err (!%p4354_p10)
}
  0x56   : > { %s4358_s30 = scalar_lea.vmem %s4852_s17, 1024  ;;  %p4366_p9 = scmp.lt.s32.totalorder %s4852_s17, %s4852_s17 }
  0x57   : > { %p4359_p12 = scmp.ne.s32.totalorder %s4852_s17, %s4358_s30  ;;  %p4367_p11 = scmp.lt.s32.totalorder %s4358_s30, %s4358_s30 }
  0x59   : > { %p4361_p0 = pnand %p4359_p12, %p4862_p7  ;;  %p4368_p13 = por %p4367_p11, %p4366_p9 }
  0x5b   : > { %p4362_p8 = pneg %p4361_p0 }
  0x5d   : > { %p4369_p1 = pnand %p4368_p13, %p4362_p8 }
  0x5f   : > { %4372 = shalt.err (!%p4369_p1)
}
  0x60   : > { %s5698_s23 = smov 64   ;;  %s5700_s24 = smov 4  }
  0x61   : > { %3945 = dma.hbm_to_vmem [thread:$0]  (!%p4848_p2), %s5741_s9, 1024, %s4852_s17, [#allocation13], %s5698_s23, %s5698_s23, %s5700_s24  }
  0x62   : > { %s43_s1 = sadd.s32 1, %s4651_s25  ;;  %s46_s8 = sadd.s32 1, %s4655_s26 }
  0x63   : > { %p44_p3 = scmp.ge.s32.totalorder %s43_s1, 2  ;;  %p3969_p5 = scmp.lt.s32.totalorder %s4659_s27, 4 }
  0x64   : > { %s4908_s16 = sand.u32 1, %s4639_s22   ;;  %p5743_p6 = scmp.ne.s32.totalorder %s5731_s13, 0 }
  0x65   : > { %s5799_s1 = smov (%p44_p3, %s43_s1), 0  ;;  %s5801_s8 = smov (!%p44_p3, %s46_s8), %s4655_s26 }
  0x66   : > { %5742 = sst [smem:[#allocation31_spill]] %s5799_s1  ;;  %s128_s15 = ssub.s32 %s4651_s25, %s5799_s1 }
  0x67   : > { %p4918_p4 = pnand %p3969_p5, %p5743_p6  ;;  %p48_p10 = scmp.ge.s32.totalorder %s5801_s8, 2 }
  0x68   : > { %p129_p12 = scmp.eq.s32.totalorder %s128_s15, 0  ;;  %s5746_s30 = sadd.s32 1, %s4639_s22 }
  0x69   : > { %s5744_s17 = scalar_select %p4918_p4, 1, 0 }
  0x6a   : > { %s5803_s8 = smov (%p48_p10, %s5801_s8), 0  ;;  %s3434_s23 = sshll.u32 %s4908_s16, 6 }
  0x6b   : > { %5745 = sst [smem:[#allocation32_spill]] %s5803_s8  ;;  %s316_s2 = ssub.s32 %s4655_s26, %s5803_s8 }
  0x6c   : > { %s4927_s0 = scalar_select %p129_p12, %s4639_s22, %s5746_s30  }
  0x6d   : > { %p317_p0 = scmp.eq.s32.totalorder %s316_s2, 0  ;;  %s3621_s24 = sshll.u32 %s4651_s25, 10 }
  0x6e   : > { %5747 = sst [smem:[#allocation33_spill]] %s4927_s0  ;;  %s442_s29 = scalar_lea.vmem [#allocation6], %s3434_s23 }
  0x6f   : > { %s449_s7 = sshll.u32 %s442_s29, 4  ;;  %s5748_s13 = sadd.s32 1, %s4627_s19  ;;  %s4943_s7 = int_to_ptr.vmem [resolvable:$true] %s449_s7 }
  0x70   : > { %s4936_s9 = scalar_select %p317_p0, %s4627_s19, %s5748_s13  }
  0x71   : > { %s5750_s4 = sld [smem:[#allocation38_spill]]  ;;  %s5751_s15 = sand.u32 1, %s4659_s27  }
  0x72   : > { %5749 = sst [smem:[#allocation34_spill]] %s4936_s9  ;;  %s4947_s30 = scalar_lea.sflag [#allocation7], %s5751_s15 }
  0x73   : > { %p4953_p9 = pneg %p4918_p4 }
  0x77   : > { %s4941_s28 = scalar_lea.hbm %s5750_s4, %s3621_s24  ;;  %s4378_s1 = scalar_lea.hbm %s5750_s4, 2048 }
  0x78   : > { %s4373_s2 = scalar_lea.hbm %s4941_s28, 1024  ;;  %p4379_p1 = scmp.lt.u32.totalorder %s4941_s28, %s5750_s4 }
  0x79   : > { %p4374_p8 = scmp.ne.s32.totalorder %s4941_s28, %s4373_s2  ;;  %p4380_p3 = scmp.lt.u32.totalorder %s4378_s1, %s4373_s2 }
  0x7a   : > { %p4382_p6 = scmp.lt.u32.totalorder %s4373_s2, %s4941_s28 }
  0x7b   : > { %p4376_p11 = pnand %p4953_p9, %p4374_p8  ;;  %p4381_p5 = por %p4380_p3, %p4379_p1 }
  0x7d   : > { %p4377_p13 = pneg %p4376_p11  ;;  %p4383_p10 = por %p4382_p6, %p4381_p5 }
  0x7f   : > { %p4384_p12 = pnand %p4383_p10, %p4377_p13 }
  0x81   : > { %4387 = shalt.err (!%p4384_p12)
}
  0x82   : > { %s4388_s15 = scalar_lea.vmem %s4943_s7, 1024  ;;  %s4665_s18 = smov [#allocation6]  }
  0x83   : > { %p4389_p0 = scmp.ne.s32.totalorder %s4943_s7, %s4388_s15  ;;  %s4393_s24 = sshll.u32 %s4665_s18, 4  ;;  %s4394_s24 = int_to_ptr.vmem [resolvable:$false] %s4393_s24 }
  0x84   : > { %s4395_s29 = scalar_lea.vmem %s4394_s24, 2048  ;;  %p4396_p2 = scmp.lt.s32.totalorder %s4943_s7, %s4394_s24 }
  0x85   : > { %p4391_p8 = pnand %p4389_p0, %p4953_p9  ;;  %p4397_p7 = scmp.lt.s32.totalorder %s4395_s29, %s4388_s15 }
  0x87   : > { %p4392_p11 = pneg %p4391_p8  ;;  %p4398_p1 = por %p4397_p7, %p4396_p2 }
  0x89   : > { %p4399_p3 = pnand %p4398_p1, %p4392_p11 }
  0x8b   : > { %4402 = shalt.err (!%p4399_p3)
}
  0x8c   : > { %s5753_s2 = smov 4   ;;  %s5754_s1 = smov 64  }
  0x8d   : > { %3955 = dma.hbm_to_vmem [thread:$0]  (!%p4918_p4), %s4941_s28, 1024, %s4943_s7, %s4947_s30, %s5754_s1, %s5754_s1, %s5753_s2  }
  0x8e   : > { %s4666_s13 = smov [#allocation14]   ;;  %s4403_s15 = scalar_lea.hbm %s5684_s10, 2048 }
  0x8f   : > { %s382_s4 = sshll.u32 %s4666_s13, 4  ;;  %p4404_p2 = scmp.ne.s32.totalorder %s5684_s10, %s4403_s15  ;;  %s383_s4 = int_to_ptr.vmem [resolvable:$true] %s382_s4 }
  0x90   : > { %p5755_p7 = scmp.ne.s32.totalorder %s5740_s12, 0  ;;  %p4410_p6 = scmp.lt.u32.totalorder %s4403_s15, %s5684_s10 }
  0x92   : > { %p4406_p13 = pnand %p4404_p2, %p5755_p7 }
  0x94   : > { %p4407_p5 = pneg %p4406_p13 }
  0x96   : > { %p4412_p10 = pnand %p4410_p6, %p4407_p5 }
  0x98   : > { %4415 = shalt.err (!%p4412_p10)
}
  0x99   : > { %s4416_s7 = scalar_lea.vmem %s383_s4, 2048  ;;  %p4424_p11 = scmp.lt.s32.totalorder %s383_s4, %s383_s4 }
  0x9a   : > { %p4417_p12 = scmp.ne.s32.totalorder %s383_s4, %s4416_s7  ;;  %p4425_p1 = scmp.lt.s32.totalorder %s4416_s7, %s4416_s7 }
  0x9c   : > { %p4419_p0 = pnand %p4417_p12, %p5755_p7  ;;  %p4426_p3 = por %p4425_p1, %p4424_p11 }
  0x9e   : > { %p4420_p8 = pneg %p4419_p0 }
  0xa0   : > { %p4427_p4 = pnand %p4426_p3, %p4420_p8 }
  0xa2   : > { %4430 = shalt.err (!%p4427_p4)
}
  0xa3   : > { %s4667_s28 = smov 128   ;;  %s4668_s26 = smov 8  }
  0xa4   : > { %p5756_p2 = scmp.ne.s32.totalorder %s5738_s11, 0  ;;  %s3914_s12 = smul.u32 192, %s4908_s16 }
  0xa5   : > { %s3915_s13 = smul.u32 3072, %s4651_s25  ;;  %s3437_s11 = sshll.u32 %s4908_s16, 8 }
  0xa6   : > { %3948 = dma.hbm_to_vmem [thread:$0]  (!%p5756_p2), %s5684_s10, 2048, %s383_s4, [#allocation13], %s4667_s28, %s4667_s28, %s4668_s26  }
  0xa7   : > { %s5003_s24 = scalar_lea.hbm %s5677_s3, %s3915_s13  ;;  %s421_s29 = scalar_lea.vmem [#allocation3], %s3914_s12 }
  0xa8   : > { %s428_s7 = sshll.u32 %s421_s29, 4  ;;  %s418_s22 = scalar_lea.sflag [#allocation4], %s4908_s16  ;;  %s5005_s7 = int_to_ptr.vmem [resolvable:$true] %s428_s7 }
  0xa9   : > { %s4431_s9 = scalar_lea.hbm %s5003_s24, 3072  ;;  %s4436_s26 = scalar_lea.hbm %s5677_s3, 6144 }
  0xaa   : > { %p4432_p4 = scmp.ne.s32.totalorder %s5003_s24, %s4431_s9  ;;  %p4437_p5 = scmp.lt.u32.totalorder %s5003_s24, %s5677_s3 }
  0xab   : > { %p4438_p6 = scmp.lt.u32.totalorder %s4436_s26, %s4431_s9  ;;  %p4440_p12 = scmp.lt.u32.totalorder %s4431_s9, %s5003_s24 }
  0xac   : > { %p4434_p7 = pnand %p4432_p4, %p4953_p9 }
  0xad   : > { %p4439_p10 = por %p4438_p6, %p4437_p5 }
  0xae   : > { %p4435_p13 = pneg %p4434_p7 }
  0xaf   : > { %p4441_p0 = por %p4440_p12, %p4439_p10 }
  0xb1   : > { %p4442_p8 = pnand %p4441_p0, %p4435_p13 }
  0xb3   : > { %4445 = shalt.err (!%p4442_p8)
}
  0xb4   : > { %s4446_s12 = scalar_lea.vmem %s5005_s7, 3072  ;;  %s4669_s13 = smov [#allocation3]  }
  0xb5   : > { %p4447_p11 = scmp.ne.s32.totalorder %s5005_s7, %s4446_s12  ;;  %s4451_s18 = sshll.u32 %s4669_s13, 4  ;;  %s4452_s18 = int_to_ptr.vmem [resolvable:$false] %s4451_s18 }
  0xb6   : > { %s4453_s15 = scalar_lea.vmem %s4452_s18, 6144  ;;  %p4454_p2 = scmp.lt.s32.totalorder %s5005_s7, %s4452_s18 }
  0xb7   : > { %p4449_p1 = pnand %p4447_p11, %p4953_p9  ;;  %p4455_p4 = scmp.lt.s32.totalorder %s4453_s15, %s4446_s12 }
  0xb9   : > { %p4450_p3 = pneg %p4449_p1  ;;  %p4456_p7 = por %p4455_p4, %p4454_p2 }
  0xbb   : > { %p4457_p5 = pnand %p4456_p7, %p4450_p3 }
  0xbd   : > { %4460 = shalt.err (!%p4457_p5)
}
  0xbe   : > { %s4670_s9 = smov 192   ;;  %s4671_s29 = smov 12  }
  0xbf   : > { %p5757_p13 = scmp.ne.s32.totalorder %s5744_s17, 0  ;;  %s3622_s4 = sshll.u32 %s4651_s25, 12 }
  0xc0   : > { %s5038_s8 = scalar_lea.hbm %s5679_s5, %s3622_s4  ;;  %s463_s0 = scalar_lea.vmem [#allocation8], %s3437_s11 }
  0xc1   : > { %3952 = dma.hbm_to_vmem [thread:$0]  (!%p5757_p13), %s5003_s24, 3072, %s5005_s7, %s418_s22, %s4670_s9, %s4670_s9, %s4671_s29  }
  0xc2   : > { %s470_s12 = sshll.u32 %s463_s0, 4  ;;  %s4461_s13 = scalar_lea.hbm %s5038_s8, 4096  ;;  %s5042_s12 = int_to_ptr.vmem [resolvable:$true] %s470_s12 }
  0xc3   : > { %p4462_p6 = scmp.ne.s32.totalorder %s5038_s8, %s4461_s13  ;;  %s4466_s7 = scalar_lea.hbm %s5679_s5, 8192 }
  0xc4   : > { %p4467_p0 = scmp.lt.u32.totalorder %s5038_s8, %s5679_s5  ;;  %p4468_p8 = scmp.lt.u32.totalorder %s4466_s7, %s4461_s13 }
  0xc5   : > { %p4464_p10 = pnand %p4462_p6, %p4953_p9  ;;  %p4470_p1 = scmp.lt.u32.totalorder %s4461_s13, %s5038_s8 }
  0xc6   : > { %p4469_p11 = por %p4468_p8, %p4467_p0 }
  0xc7   : > { %p4465_p12 = pneg %p4464_p10 }
  0xc8   : > { %p4471_p3 = por %p4470_p1, %p4469_p11 }
  0xca   : > { %p4472_p2 = pnand %p4471_p3, %p4465_p12 }
  0xcc   : > { %4475 = shalt.err (!%p4472_p2)
}
  0xcd   : > { %s4476_s9 = scalar_lea.vmem %s5042_s12, 4096  ;;  %s4672_s29 = smov [#allocation8]  }
  0xce   : > { %p4477_p4 = scmp.ne.s32.totalorder %s5042_s12, %s4476_s9  ;;  %s4481_s28 = sshll.u32 %s4672_s29, 4  ;;  %s4482_s28 = int_to_ptr.vmem [resolvable:$false] %s4481_s28 }
  0xcf   : > { %s4483_s26 = scalar_lea.vmem %s4482_s28, 8192  ;;  %p4484_p6 = scmp.lt.s32.totalorder %s5042_s12, %s4482_s28 }
  0xd0   : > { %p4479_p7 = pnand %p4477_p4, %p4953_p9  ;;  %p4485_p10 = scmp.lt.s32.totalorder %s4483_s26, %s4476_s9 }
  0xd2   : > { %p4480_p5 = pneg %p4479_p7  ;;  %p4486_p0 = por %p4485_p10, %p4484_p6 }
  0xd4   : > { %p4487_p8 = pnand %p4486_p0, %p4480_p5 }
  0xd6   : > { %4490 = shalt.err (!%p4487_p8)
}
  0xd7   : > { %s4673_s0 = smov 256   ;;  %s4674_s13 = smov 16  }
  0xd8   : > { %3958 = dma.hbm_to_vmem [thread:$0]  (!%p5757_p13), %s5038_s8, 4096, %s5042_s12, %s4947_s30, %s4673_s0, %s4673_s0, %s4674_s13  }
  0xd9   : > { %s5071_s7 = scalar_lea.hbm %s5680_s6, %s3622_s4  ;;  %s484_s18 = scalar_lea.vmem [#allocation9], %s3437_s11 }
  0xda   : > { %s491_s15 = sshll.u32 %s484_s18, 4  ;;  %s5758_s9 = sand.u32 1, %s4659_s27   ;;  %s5075_s15 = int_to_ptr.vmem [resolvable:$true] %s491_s15 }
  0xdb   : > { %s5079_s29 = scalar_lea.sflag [#allocation10], %s5758_s9  ;;  %s4491_s28 = scalar_lea.hbm %s5071_s7, 4096 }
  0xdc   : > { %p4492_p12 = scmp.ne.s32.totalorder %s5071_s7, %s4491_s28  ;;  %s4496_s16 = scalar_lea.hbm %s5680_s6, 8192 }
  0xdd   : > { %p4497_p3 = scmp.lt.u32.totalorder %s5071_s7, %s5680_s6  ;;  %p4498_p2 = scmp.lt.u32.totalorder %s4496_s16, %s4491_s28 }
  0xde   : > { %p4494_p11 = pnand %p4492_p12, %p4953_p9  ;;  %p4500_p7 = scmp.lt.u32.totalorder %s4491_s28, %s5071_s7 }
  0xdf   : > { %p4499_p4 = por %p4498_p2, %p4497_p3 }
  0xe0   : > { %p4495_p1 = pneg %p4494_p11 }
  0xe1   : > { %p4501_p5 = por %p4500_p7, %p4499_p4 }
  0xe3   : > { %p4502_p6 = pnand %p4501_p5, %p4495_p1 }
  0xe5   : > { %4505 = shalt.err (!%p4502_p6)
}
  0xe6   : > { %s4506_s11 = scalar_lea.vmem %s5075_s15, 4096  ;;  %s4675_s26 = smov [#allocation9]  }
  0xe7   : > { %p4507_p10 = scmp.ne.s32.totalorder %s5075_s15, %s4506_s11  ;;  %s4511_s0 = sshll.u32 %s4675_s26, 4  ;;  %s4512_s0 = int_to_ptr.vmem [resolvable:$false] %s4511_s0 }
  0xe8   : > { %s4513_s13 = scalar_lea.vmem %s4512_s0, 8192  ;;  %p4514_p12 = scmp.lt.s32.totalorder %s5075_s15, %s4512_s0 }
  0xe9   : > { %p4509_p0 = pnand %p4507_p10, %p4953_p9  ;;  %p4515_p11 = scmp.lt.s32.totalorder %s4513_s13, %s4506_s11 }
  0xeb   : > { %p4510_p8 = pneg %p4509_p0  ;;  %p4516_p3 = por %p4515_p11, %p4514_p12 }
  0xed   : > { %p4517_p2 = pnand %p4516_p3, %p4510_p8 }
  0xef   : > { %4520 = shalt.err (!%p4517_p2)
}
  0xf0   : > { %3961 = dma.hbm_to_vmem [thread:$0]  (!%p5757_p13), %s5071_s7, 4096, %s5075_s15, %s5079_s29, %s5754_s1, %s5754_s1, %s5753_s2  }
  0xf1   : > { %p5759_p9 = scmp.ne.s32.totalorder %s5737_s20, 0 }
  0xf2   : > { %s505_s23 = sand.u32 (!%p5759_p9), 1, %s4635_s21   ;;  %p5760_p1 = scmp.ne.s32.totalorder (!%p5759_p9), %s5732_s14, 0 }
  0xf3   : > { %503 = sbr.rel (%p5759_p9) target bundleno = 5274 (0x149a), region = 64  ;;  %s506_s24 = scalar_lea.sflag (!%p5759_p9), [#allocation4], %s505_s23 }
  0xf4   : > { %s3916_s22 = smul.u32 (!%p5759_p9), 192, %s505_s23 }
  0xf6   : > { %s5109_s18 = scalar_lea.vmem (!%p5759_p9), [#allocation3], %s3916_s22 }
  0xfa   : > { %4594 = dma.done.wait (%p5760_p1), %s506_s24, 3072  }
  0xfb   : > { %4596 = vsyncadd (%p5760_p1), %s506_s24, 4294964224  ;;  %s5761_s17 = sld [smem:[#allocation28_spill]]  ;;  %s3444_s28 = sshll.u32 %s505_s23, 6 }
  0xfc   : > { %s5116_s1 = scalar_lea.vmem [#allocation6], %s3444_s28 }
 0x101   : > { %s514_s9 = sand.u32 1, %s5761_s17  }
 0x102   : > { %s515_s2 = scalar_lea.sflag [#allocation7], %s514_s9 }
 0x103   : > { %4598 = dma.done.wait (%p5760_p1), %s515_s2, 5120  }
 0x104   : > { %4600 = vsyncadd (%p5760_p1), %s515_s2, 4294962176  ;;  %s3445_s20 = sshll.u32 %s505_s23, 8  ;;  %s533_s15 = scalar_lea.sflag [#allocation10], %s514_s9 }
 0x105   : > { %s5122_s7 = scalar_lea.vmem [#allocation8], %s3445_s20  ;;  %s5124_s29 = scalar_lea.vmem [#allocation9], %s3445_s20 }
 0x106   : > { %4602 = dma.done.wait (%p5760_p1), %s533_s15, 4096  }
 0x107   : > { %4604 = vsyncadd (%p5760_p1), %s533_s15, 4294963200  ;;  %p5762_p13 = scmp.eq.s32.totalorder %s5761_s17, 0 }
 0x109   : > { %4606 = dma.done.wait (%p5762_p13), [#allocation10], 512   ;;  %p5763_p4 = pmov %p5762_p13 }
 0x10b   : > { %4608 = vsyncadd (%p5763_p4), [#allocation10], 4294966784  ;;  %p5764_p7 = pmov %p5763_p4 }
 0x10c   : > { %p5765_p5 = pmov %p5763_p4 }
 0x10d   : > { %4610 = dma.done.wait (%p5764_p7), [#allocation13], 3072  }
 0x10e   : > { %4612 = vsyncadd (%p5765_p5), [#allocation13], 4294964224  ;;  %s5766_s30 = sld [smem:[#allocation23_spill]]  ;;  %s5767_s4 = sld [smem:[#allocation26_spill]] }
 0x10f   : > { %s5768_s16 = sld [smem:[#allocation25_spill]]  ;;  %s5769_s13 = sld [smem:[#allocation36_spill]] }
 0x110   : > { %s5770_s17 = sld [smem:[#allocation35_spill]]  ;;  %s5771_s15 = sld [smem:[#allocation37_spill]] }
 0x114   : > { %s5715_s14 = sand.u32 1, %s5766_s30   ;;  %p614_p6 = scmp.lt.s32.totalorder %s5767_s4, 1 }
 0x115   : > { %s3450_s8 = sshll.u32 %s5715_s14, 4  ;;  %p621_p10 = scmp.lt.s32.totalorder %s5768_s16, 1 }
 0x116   : > { %s5805_s4 = smov (!%p614_p6, %s5767_s4), 1  ;;  %s5160_s14 = scalar_lea.vmem [#allocation15], %s3450_s8 }
 0x117   : > { %s622_s12 = scalar_select %p621_p10, %s5768_s16, 1 }
 0x118   : > { %s3451_s11 = sshll.u32 %s5805_s4, 3  ;;  %s620_s23 = scalar_lea.vmem %s5769_s13, %s5805_s4 }
 0x119   : > { %s617_s9 = scalar_lea.vmem %s5770_s17, %s3451_s11  ;;  %s3624_s28 = sshll.u32 %s622_s12, 5 }
 0x11a   : > { %s5158_s30 = scalar_lea.vmem %s5771_s15, %s3624_s28  ;;  %p3454_p0 = scmp.ne.s32.totalorder %s5768_s16, 0 }
 0x11b   : > { %v631_v0 = vld [vmem:[%s617_s9] sm:$0xff] (!%p3454_p0) }
 0x11c   : > { %630 = sbr.rel (%p3454_p0) target bundleno = 291 (0x123), region = 96  ;;  %632 = vst [vmem:[#allocation2] sm:$0xff] (!%p3454_p0), %v631_v0 }
 0x123 PF: > { %v5163_v1 = vld [vmem:[#allocation2] sm:$0xff]  ;;  %v4087_v2 = vld [vmem:[%s5109_s18 + $0x4] ss:$12 sps:$4 sm:$0xff]   ;;  %v4089_v3 = vld [vmem:[%s5109_s18] ss:$12 sps:$4 sm:$0xff]   ;;  %v4676_v4 = vmov 0.0   ;;  %v635_v34 = vlaneseq }
 0x124   : > { %653 = vadd.xlane.f32.xlu0 %v5163_v1  ;;  %3738 = vmatprep.subr.bf16.mxu1 %v4676_v4  ;;  %v4090_v5 = vld [vmem:[%s5109_s18 + $0x8] ss:$12 sps:$4 sm:$0xff]   ;;  %v4093_v7 = vld [vmem:[%s5109_s18 + $0x18] ss:$12 sps:$4 sm:$0xff]   ;;  %v4094_v8 = vld [vmem:[%s5109_s18 + $0x20] ss:$12 sps:$4 sm:$0xff]  }
 0x125   : > { %v4091_v6 = vld [vmem:[%s5109_s18 + $0x1c] ss:$12 sps:$4 sm:$0xff]   ;;  %864 = vmatprep.subr.bf16.mxu0 %v4087_v2  ;;  %v4095_v9 = vld [vmem:[%s5109_s18 + $0x34] ss:$12 sps:$4 sm:$0xff]   ;;  %3739 = vmatpush3.bf16.msra.mxu1 %v4090_v5  ;;  %v4098_v15 = vld [vmem:[%s5109_s18 + $0x38] ss:$12 sps:$4 sm:$0xff]  }
 0x126   : > { %865 = vmatpush1.bf16.msra.mxu0 %v4089_v3  ;;  %3740 = vmatprep.subr.bf16.mxu1 %v4676_v4  ;;  %v4097_v14 = vld [vmem:[%s5109_s18 + $0x30] ss:$12 sps:$4 sm:$0xff]   ;;  %v4099_v16 = vld [vmem:[%s5109_s18 + $0x4c] ss:$12 sps:$4 sm:$0xff]   ;;  %v4101_v17 = vld [vmem:[%s5109_s18 + $0x48] ss:$12 sps:$4 sm:$0xff]  }
 0x127   : > { %866 = vmatprep.subr.bf16.mxu0 %v4091_v6  ;;  %v4102_v18 = vld [vmem:[%s5109_s18 + $0x50] ss:$12 sps:$4 sm:$0xff]   ;;  %v4105_v20 = vld [vmem:[%s5109_s18 + $0x60] ss:$12 sps:$4 sm:$0xff]   ;;  %v4106_v21 = vld [vmem:[%s5109_s18 + $0x68] ss:$12 sps:$4 sm:$0xff]  }
 0x128   : > { %v4103_v19 = vld [vmem:[%s5109_s18 + $0x64] ss:$12 sps:$4 sm:$0xff]   ;;  %v4107_v22 = vld [vmem:[%s5109_s18 + $0x7c] ss:$12 sps:$4 sm:$0xff]   ;;  %v4110_v24 = vld [vmem:[%s5109_s18 + $0x80] ss:$12 sps:$4 sm:$0xff]  }
 0x129   : > { %3741 = vmatpush3.bf16.msra.mxu1 %v4094_v8  ;;  %v4109_v23 = vld [vmem:[%s5109_s18 + $0x78] ss:$12 sps:$4 sm:$0xff]   ;;  %v4111_v25 = vld [vmem:[%s5109_s18 + $0x94] ss:$12 sps:$4 sm:$0xff]   ;;  %v4677_v26 = vmov 0   ;;  %vm4678_vm0 = vmmov 0  }
 0x12a   : > { %867 = vmatpush1.bf16.msra.mxu0 %v4093_v7  ;;  %3742 = vmatprep.subr.bf16.mxu1 %v4676_v4  ;;  %v4113_v27 = vld [vmem:[%s5109_s18 + $0x90] ss:$12 sps:$4 sm:$0xff]   ;;  %v4114_v28 = vld [vmem:[%s5109_s18 + $0x98] ss:$12 sps:$4 sm:$0xff]   ;;  %v4117_v30 = vld [vmem:[%s5109_s18 + $0xa8] ss:$12 sps:$4 sm:$0xff]  }
 0x12b   : > { %868 = vmatprep.subr.bf16.mxu0 %v4095_v9  ;;  %896 = vmatprep.mubr.bf16.mxu0 %v4677_v26  ;;  %v4115_v29 = vld [vmem:[%s5109_s18 + $0xac] ss:$12 sps:$4 sm:$0xff]   ;;  %v4118_v31 = vld [vmem:[%s5109_s18 + $0xb0] ss:$12 sps:$4 sm:$0xff]   ;;  %v5204_v36 = vshrl.u32 %v635_v34, 7  ;;  %v5224_v48 = vld [vmem:[%s5158_s30 + $0x8] sm:$0xff] }
 0x12c   : > { %3754 = vmatprep.mubr.msk.bf16.mxu1 %vm4678_vm0, %v4676_v4  ;;  %v5210_v38 = vld [vmem:[%s5158_s30] sm:$0xff]  ;;  %v5228_v50 = vld [vmem:[%s5158_s30 + $0x10] sm:$0xff]  ;;  %vm947_vm1 = vcmask 261120   ;;  %s4679_s18 = smov 96   ;;  %s4680_s16 = smov 32   ;;  %vm1013_vm2 = vcmask 1043456  }
 0x12d   : > { %3743 = vmatpush3.bf16.msra.mxu1 %v4098_v15  ;;  %v5207_v37 = vsub.s32 0, %v5204_v36  ;;  %v672_v39 = vsub.s32 1, %v5204_v36  ;;  %v726_v47 = vsub.s32 6, %v5204_v36  ;;  %v5249_v7 = vld [vmem:[%s620_s23] sm:$0x1]  ;;  %v638_v9 = vand.u32 127, %v635_v34 }
 0x12e   : > { %869 = vmatpush1.bf16.msra.mxu0 %v4097_v14  ;;  %3744 = vmatprep.subr.bf16.mxu1 %v4676_v4  ;;  %vm634_vm3 = vcmp.gt.f32.partialorder %v5249_v7, 0.5  ;;  %vm996_vm7 = vcmask 64512   ;;  %s4682_s4 = smov 64   ;;  %vm1409_vm8 = vcmask 523264   ;;  %vm1411_vm9 = vcmask 785408  }
 0x12f   : > { %870 = vmatprep.subr.bf16.mxu0 %v4099_v16  ;;  %v668_v40 = vrot.slane %v5210_v38, %v5207_v37  ;;  %v673_v43 = vrot.slane %v5210_v38, %v672_v39  ;;  %v731_v49 = vrot.slane %v5224_v48, %v726_v47  ;;  %v735_v55 = vrot.slane %v5228_v50, %v726_v47 }
 0x130   : > { %v727_v61 = vrot.slane %v5210_v38, %v726_v47  ;;  %v640_v8 = vsel %vm634_vm3, 1, %v4677_v26  ;;  %vm639_vm4 = vcmp.ge.s32.totalorder %v5204_v36, %v638_v9 }
 0x131   : > { %3745 = vmatpush3.bf16.msra.mxu1 %v4102_v18 }
 0x132   : > { %871 = vmatpush1.bf16.msra.mxu0 %v4101_v17  ;;  %3746 = vmatprep.subr.bf16.mxu1 %v4676_v4 }
 0x133   : > { %872 = vmatprep.subr.bf16.mxu0 %v4103_v19 }
 0x135   : > { %3747 = vmatpush3.bf16.msra.mxu1 %v4106_v21 }
 0x136   : > { %873 = vmatpush1.bf16.msra.mxu0 %v4105_v20  ;;  %3748 = vmatprep.subr.bf16.mxu1 %v4676_v4 }
 0x137   : > { %874 = vmatprep.subr.bf16.mxu0 %v4107_v22 }
 0x139   : > { %3749 = vmatpush3.bf16.msra.mxu1 %v4110_v24 }
 0x13a   : > { %875 = vmatpush1.bf16.msra.mxu0 %v4109_v23  ;;  %3750 = vmatprep.subr.bf16.mxu1 %v4676_v4 }
 0x13b   : > { %876 = vmatprep.subr.bf16.mxu0 %v4111_v25 }
 0x13d   : > { %3751 = vmatpush3.bf16.msra.mxu1 %v4114_v28 }
 0x13e   : > { %877 = vmatpush1.bf16.msra.mxu0 %v4113_v27  ;;  %3752 = vmatprep.subr.bf16.mxu1 %v4676_v4 }
 0x13f   : > { %878 = vmatprep.subr.bf16.mxu0 %v4115_v29 }
 0x141   : > { %3753 = vmatpush3.bf16.msra.mxu1 %v4118_v31 }
 0x142   : > { %879 = vmatpush1.bf16.msra.mxu0 %v4117_v30  ;;  %3758 = vmatprep.subr.bf16.mxu1 %v4676_v4 }
 0x143   : > { %3782 = vmatprep.subr.bf16.mxu0 %v4676_v4 }
 0x1b1   : > { %v654_v10 = vpop.xlane.xlu0 %653 }
 0x1b2   : > { %v656_v11 = vmul.f32 0.0078125, %v654_v10  ;;  %v644_v10 = vrot.slane %v640_v8, %v5207_v37 }
 0x1b4   : > { %v657_v12 = vsub.f32 %v5163_v1, %v656_v11  ;;  %vm645_vm5 = vcmp.eq.s32.totalorder %v644_v10, 1 }
 0x1b5   : > { %vm646_vm6 = vmand %vm639_vm4, %vm645_vm5 }
 0x1b6   : > { %v658_v13 = vmul.f32 %v657_v12, %v657_v12 }
 0x1b8   : > { %659 = vadd.xlane.f32.xlu0 %v658_v13 }
 0x245   : > { %v660_v32 = vpop.xlane.xlu0 %659 }
 0x246   : > { %v661_v33 = vmul.f32 0.0078125, %v660_v32 }
 0x248   : > { %v662_v35 = vadd.f32 1e-05, %v661_v33 }
 0x24a   : > { %4207 = vrsqrt.f32 %v662_v35 }
 0x254   : > { %v4208_v41 = vpop.eup %4207 }
 0x255   : > { %v664_v42 = vmul.f32 %v4208_v41, %v657_v12  ;;  %v4681_v12 = vmov -1e+09  }
 0x256   : > { %v5257_v13 = vsel %vm646_vm6, 0.0, %v4681_v12 }
 0x257   : > { %v669_v44 = vmul.f32 %v668_v40, %v664_v42 }
 0x259   : > { %v674_v45 = vadd.f32 %v673_v43, %v669_v44 }
 0x25b   : > { %v723_v46 = vpack.c.bf16 %v674_v45, %v674_v45 }
 0x25d   : > { %897 = vmatmul.mubr.bf16.vlgmr.msra.gmra.mrb[0].mxu0 %v723_v46  ;;  %3755 = vmatmul.mubr.bf16.vlgmr.msra.gmra.mrb[0].mxu1 %v723_v46 }
 0x25e   : > { %3760 = vmatprep.mubr.msk.bf16.mxu1 %vm4678_vm0, %v4676_v4  ;;  %3784 = vmatprep.mubr.msk.bf16.mxu0 %vm4678_vm0, %v4676_v4 }
 0x330   : > { %v898_v51 = vpop.f32.mrb[0].mxu0  ;;  %v939_v52 = vpop.f32.mrb[0].mxu1 }
 0x331   : > { %v900_v53 = vpop.f32.mrb[1].mxu0  ;;  %v3756_v54 = vpop.f32.mrb[1].mxu1  ;;  %v940_v63 = vadd.f32 %v939_v52, %v735_v55  ;;  %v899_v2 = vadd.f32 %v898_v51, %v727_v61 }
 0x332   : > { %v901_v56 = vadd.f32 %v900_v53, %v731_v49  ;;  %v902_v57 = vpop.f32.mrb[2].mxu0  ;;  %v942_v58 = vpop.f32.mrb[2].mxu1 }
 0x333   : > { %v903_v59 = vpop.f32.mrb[3].mxu0  ;;  %v3757_v60 = vpop.f32.mrb[3].mxu1  ;;  %v5235_v3 = vpack.c.bf16 %v940_v63, %v940_v63  ;;  %v945_v5 = vpack.c.bf16 %v899_v2, %v899_v2 }
 0x334   : > { %v946_v62 = vpack.c.bf16 %v901_v56, %v901_v56 }
 0x335   : > { %v1015_v6 = vsel %vm1013_vm2, %v5235_v3, 0 }
 0x336   : > { %1061 = vrot.lane.b32.xlu0 %v946_v62, %s4679_s18  ;;  %v952_v0 = vsel %vm947_vm1, %v946_v62, 0 }
 0x337   : > { %3759 = vmatpush3.bf16.xpose.msra.mxu1 %v952_v0 }
 0x338   : > { %3764 = vmatprep.subr.bf16.mxu1 %v4676_v4 }
 0x33a   : > { %1286 = vrot.lane.b32.xlu0 %v946_v62, %s4680_s16 }
 0x33e   : > { %3761 = vmatmul.mubr.msk.bf16.vlgmr.msra.gmra.mrb[4].mxu1 %vm947_vm1, %v945_v5 }
 0x33f   : > { %3765 = vmatpush3.bf16.msra.mxu1 %v1015_v6  ;;  %3766 = vmatprep.mubr.msk.bf16.mxu1 %vm4678_vm0, %v4676_v4 }
 0x340   : > { %3770 = vmatprep.subr.bf16.mxu1 %v4676_v4 }
 0x3a8   : > { %v1062_v28 = vpop.permute.xlu0 %1061 }
 0x3a9   : > { %v1067_v35 = vsel %vm947_vm1, %v1062_v28, 0 }
 0x3ac   : > { %v1287_v33 = vpop.permute.xlu0 %1286 }
 0x3ad   : > { %v1292_v41 = vsel %vm947_vm1, %v1287_v33, 0 }
 0x411   : > { %v988_v11 = vpop.f32.mrb[4].mxu1 }
 0x412   : > { %v994_v14 = vmul.f32 0.17677669, %v988_v11  ;;  %v3762_v15 = vpop.f32.mrb[5].mxu1 }
 0x413   : > { %v991_v16 = vpop.f32.mrb[6].mxu1 }
 0x414   : > { %v3763_v17 = vpop.f32.mrb[7].mxu1  ;;  %v995_v18 = vadd.f32 %v994_v14, %v5257_v13 }
 0x416   : > { %v997_v19 = vsel %vm996_vm7, %v995_v18, -inf }
 0x417   : > { %998 = vmax.xlane.f32.xlu1 %v997_v19 }
 0x4a4   : > { %v999_v20 = vpop.xlane.xlu1 %998 }
 0x4a5   : > { %v1000_v21 = vsub.f32 %v995_v18, %v999_v20 }
 0x4a7   : > { %v1001_v22 = vmul.f32 1.442695, %v1000_v21 }
 0x4a9   : > { %4209 = vpow2.f32 %v1001_v22 }
 0x4b3   : > { %v4210_v23 = vpop.eup %4209 }
 0x4b4   : > { %v1003_v24 = vsel %vm996_vm7, %v4210_v23, 0.0 }
 0x4b5   : > { %1004 = vadd.xlane.f32.xlu1 %v1003_v24 }
 0x4c6   : > { %1058 = vrot.lane.b32.xlu1 %v945_v5, %s4679_s18 }
 0x4ca   : > { %1174 = vrot.lane.b32.xlu1 %v946_v62, %s4682_s4 }
 0x4ce   : > { %1172 = vrot.lane.b32.xlu1 %v945_v5, %s4682_s4 }
 0x4d2   : > { %1284 = vrot.lane.b32.xlu1 %v945_v5, %s4680_s16 }
 0x542   : > { %v1005_v25 = vpop.xlane.xlu1 %1004 }
 0x543   : > { %4211 = vrcp.f32 %v1005_v25 }
 0x546   : > { %v1059_v27 = vpop.permute.xlu1 %1058 }
 0x54a   : > { %v1175_v29 = vpop.permute.xlu1 %1174 }
 0x54b   : > { %v1180_v30 = vsel %vm947_vm1, %v1175_v29, 0 }
 0x54c   : > { %3783 = vmatpush3.bf16.xpose.msra.mxu0 %v1180_v30 }
 0x54d   : > { %v4212_v31 = vpop.eup %4211  ;;  %3794 = vmatprep.subr.bf16.mxu0 %v4676_v4 }
 0x54e   : > { %v1007_v32 = vmul.f32 %v4212_v31, %v4210_v23  ;;  %v1173_v40 = vpop.permute.xlu1 %1172 }
 0x550   : > { %v1008_v34 = vpack.c.bf16 %v1007_v32, %v1007_v32 }
 0x552   : > { %3767 = vmatmul.mubr.msk.bf16.vlgmr.msra.gmra.mrb[8].mxu1 %vm996_vm7, %v1008_v34  ;;  %v1285_v42 = vpop.permute.xlu1 %1284 }
 0x553   : > { %3771 = vmatpush3.bf16.xpose.msra.mxu1 %v1067_v35  ;;  %3785 = vmatmul.mubr.msk.bf16.vlgmr.msra.gmra.mrb[4].mxu0 %vm947_vm1, %v1173_v40 }
 0x554   : > { %3795 = vmatpush3.bf16.xpose.msra.mxu0 %v1292_v41  ;;  %3772 = vmatprep.mubr.msk.bf16.mxu1 %vm4678_vm0, %v4676_v4 }
 0x555   : > { %3796 = vmatprep.mubr.msk.bf16.mxu0 %vm4678_vm0, %v4676_v4  ;;  %3776 = vmatprep.subr.bf16.mxu1 %v4676_v4 }
 0x556   : > { %3806 = vmatprep.subr.bf16.mxu0 %v4676_v4 }
 0x55a   : > { %3773 = vmatmul.mubr.msk.bf16.vlgmr.msra.gmra.mrb[12].mxu1 %vm947_vm1, %v1059_v27 }
 0x55b   : > { %3797 = vmatmul.mubr.msk.bf16.vlgmr.msra.gmra.mrb[8].mxu0 %vm947_vm1, %v1285_v42  ;;  %3778 = vmatprep.mubr.msk.bf16.mxu1 %vm4678_vm0, %v4676_v4 }
 0x55c   : > { %3822 = vmatprep.mubr.msk.bf16.mxu0 %vm4678_vm0, %v4676_v4 }
 0x625   : > { %v5284_v43 = vpop.f32.mrb[8].mxu1 }
 0x626   : > { %v3768_v44 = vpop.f32.mrb[9].mxu1  ;;  %v1216_v45 = vpop.f32.mrb[4].mxu0 }
 0x627   : > { %v1222_v46 = vmul.f32 0.17677669, %v1216_v45  ;;  %v1054_v47 = vpop.f32.mrb[10].mxu1  ;;  %v3786_v49 = vpop.f32.mrb[5].mxu0 }
 0x628   : > { %v3769_v51 = vpop.f32.mrb[11].mxu1  ;;  %v1219_v52 = vpop.f32.mrb[6].mxu0  ;;  %v4119_v49 = vld [vmem:[%s5116_s1] sm:$0xff]  }
 0x629   : > { %v3787_v53 = vpop.f32.mrb[7].mxu0  ;;  %v1223_v54 = vadd.f32 %v1222_v46, %v5257_v13  ;;  %3807 = vmatpush3.bf16.msra.mxu0 %v4119_v49  ;;  %v4120_v51 = vld [vmem:[%s5116_s1 + $0x8] sm:$0xff]   ;;  %v4121_v52 = vld [vmem:[%s5116_s1 + $0x10] sm:$0xff]  }
 0x62a   : > { %3808 = vmatprep.subr.bf16.mxu0 %v4676_v4  ;;  %v4122_v53 = vld [vmem:[%s5116_s1 + $0x18] sm:$0xff]   ;;  %v4151_v49 = vld [vmem:[%s5122_s7 + $0x80] ss:$16 sps:$4 sm:$0xff]  }
 0x62b   : > { %v1224_v55 = vsel %vm996_vm7, %v1223_v54, -inf }
 0x62c   : > { %1225 = vmax.xlane.f32.xlu1 %v1224_v55  ;;  %v4124_v55 = vld [vmem:[%s5116_s1 + $0x28] sm:$0xff]  }
 0x62d   : > { %v1103_v56 = vpop.f32.mrb[12].mxu1  ;;  %3809 = vmatpush3.bf16.msra.mxu0 %v4120_v51  ;;  %v4154_v51 = vld [vmem:[%s5122_s7 + $0x88] ss:$16 sps:$4 sm:$0xff]  }
 0x62e   : > { %v1109_v57 = vmul.f32 0.17677669, %v1103_v56  ;;  %v3774_v58 = vpop.f32.mrb[13].mxu1  ;;  %v1328_v59 = vpop.f32.mrb[8].mxu0  ;;  %3810 = vmatprep.subr.bf16.mxu0 %v4676_v4  ;;  %v4125_v56 = vld [vmem:[%s5116_s1 + $0x30] sm:$0xff]  }
 0x62f   : > { %v1334_v60 = vmul.f32 0.17677669, %v1328_v59  ;;  %v1106_v61 = vpop.f32.mrb[14].mxu1  ;;  %v3798_v62 = vpop.f32.mrb[9].mxu0 }
 0x630   : > { %v3775_v63 = vpop.f32.mrb[15].mxu1  ;;  %v1331_v0 = vpop.f32.mrb[10].mxu0  ;;  %v1110_v2 = vadd.f32 %v1109_v57, %v5257_v13  ;;  %v4126_v61 = vld [vmem:[%s5116_s1 + $0x38] sm:$0xff]  }
 0x631   : > { %v3799_v5 = vpop.f32.mrb[11].mxu0  ;;  %v1335_v8 = vadd.f32 %v1334_v60, %v5257_v13  ;;  %3811 = vmatpush3.bf16.msra.mxu0 %v4121_v52  ;;  %v4159_v52 = vld [vmem:[%s5122_s7 + $0xa4] ss:$16 sps:$4 sm:$0xff]  }
 0x632   : > { %v1111_v6 = vsel %vm996_vm7, %v1110_v2, -inf  ;;  %3812 = vmatprep.subr.bf16.mxu0 %v4676_v4 }
 0x633   : > { %1112 = vmax.xlane.f32.xlu0 %v1111_v6  ;;  %v1336_v9 = vsel %vm996_vm7, %v1335_v8, -inf }
 0x635   : > { %3813 = vmatpush3.bf16.msra.mxu0 %v4122_v53  ;;  %v4162_v53 = vld [vmem:[%s5122_s7 + $0xac] ss:$16 sps:$4 sm:$0xff]  }
 0x636   : > { %3814 = vmatprep.subr.bf16.mxu0 %v4676_v4 }
 0x637   : > { %1337 = vmax.xlane.f32.xlu0 %v1336_v9 }
 0x6b9   : > { %v1226_v10 = vpop.xlane.xlu1 %1225 }
 0x6ba   : > { %v1227_v11 = vsub.f32 %v1223_v54, %v1226_v10  ;;  %v4123_v54 = vld [vmem:[%s5116_s1 + $0x20] sm:$0xff]   ;;  %s5773_s1 = sld [smem:[#allocation25_spill]] }
 0x6bb   : > { %3815 = vmatpush3.bf16.msra.mxu0 %v4123_v54  ;;  %v4157_v54 = vld [vmem:[%s5122_s7 + $0xa0] ss:$16 sps:$4 sm:$0xff]  }
 0x6bc   : > { %v1228_v12 = vmul.f32 1.442695, %v1227_v11  ;;  %3816 = vmatprep.subr.bf16.mxu0 %v4676_v4 }
 0x6be   : > { %4213 = vpow2.f32 %v1228_v12 }
 0x6bf   : > { %3817 = vmatpush3.bf16.msra.mxu0 %v4124_v55  ;;  %v4160_v55 = vld [vmem:[%s5122_s7 + $0xa8] ss:$16 sps:$4 sm:$0xff]  }
 0x6c0   : > { %v1113_v14 = vpop.xlane.xlu0 %1112  ;;  %3818 = vmatprep.subr.bf16.mxu0 %v4676_v4  ;;  %p3559_p8 = scmp.ne.s32.totalorder %s5773_s1, 1 }
 0x6c1   : > { %v1114_v15 = vsub.f32 %v1110_v2, %v1113_v14  ;;  %s5774_s26 = sld [smem:[#allocation40_spill]] (!%p3559_p8)  ;;  %vm4685_vm10 = vmmov (!%p3559_p8), 0   ;;  %s4686_s17 = smov (!%p3559_p8), 64  }
 0x6c2   : > { %s4687_s9 = smov (!%p3559_p8), 96   ;;  %s4688_s28 = smov (!%p3559_p8), 32  }
 0x6c3   : > { %v1115_v16 = vmul.f32 1.442695, %v1114_v15  ;;  %3819 = vmatpush3.bf16.msra.mxu0 %v4125_v56  ;;  %v4165_v56 = vld [vmem:[%s5122_s7 + $0xc4] ss:$16 sps:$4 sm:$0xff]  }
 0x6c4   : > { %v1338_v17 = vpop.xlane.xlu0 %1337  ;;  %3820 = vmatprep.subr.bf16.mxu0 %v4676_v4 }
 0x6c5   : > { %4215 = vpow2.f32 %v1115_v16  ;;  %v1339_v18 = vsub.f32 %v1335_v8, %v1338_v17  ;;  %v1416_v17 = vsub.s32 4, %v5204_v36 }
 0x6c7   : > { %v1340_v19 = vmul.f32 1.442695, %v1339_v18  ;;  %3821 = vmatpush3.bf16.msra.mxu0 %v4126_v61  ;;  %v1417_v18 = vrot.slane %v5210_v38, %v1416_v17  ;;  %v4174_v61 = vld [vmem:[%s5122_s7 + $0xec] ss:$16 sps:$4 sm:$0xff]   ;;  %v4176_v17 = vld [vmem:[%s5124_s29 + $0xc0] sm:$0xff]   ;;  %s5775_s0 = smov (!%p3559_p8), %s5774_s26 }
 0x6c8   : > { %v4214_v20 = vpop.eup %4213 }
 0x6c9   : > { %4217 = vpow2.f32 %v1340_v19  ;;  %v1230_v21 = vsel %vm996_vm7, %v4214_v20, 0.0 }
 0x6ca   : > { %1231 = vadd.xlane.f32.xlu0 %v1230_v21 }
 0x6cf   : > { %v4216_v13 = vpop.eup %4215 }
 0x6d0   : > { %v1117_v22 = vsel %vm996_vm7, %v4216_v13, 0.0 }
 0x6d1   : > { %1118 = vadd.xlane.f32.xlu0 %v1117_v22 }
 0x6d3   : > { %v4218_v23 = vpop.eup %4217 }
 0x6d4   : > { %v1342_v24 = vsel %vm996_vm7, %v4218_v23, 0.0 }
 0x6d5   : > { %1343 = vadd.xlane.f32.xlu1 %v1342_v24  ;;  %v4130_v24 = vld [vmem:[%s5122_s7 + $0x8] ss:$16 sps:$4 sm:$0xff]  }
 0x6e6   : > { %1236 = vrot.lane.b32.xlu1 %v5235_v3, %s4682_s4 }
 0x6e7   : > { %1124 = vrot.lane.b32.xlu0 %v5235_v3, %s4679_s18 }
 0x6ea   : > { %1348 = vrot.lane.b32.xlu1 %v5235_v3, %s4680_s16 }
 0x757   : > { %v1232_v25 = vpop.xlane.xlu0 %1231 }
 0x75e   : > { %v1119_v27 = vpop.xlane.xlu0 %1118 }
 0x75f   : > { %4219 = vrcp.f32 %v1119_v27  ;;  %v4135_v27 = vld [vmem:[%s5122_s7 + $0x24] ss:$16 sps:$4 sm:$0xff]  }
 0x760   : > { %4221 = vrcp.f32 %v1232_v25  ;;  %v4132_v25 = vld [vmem:[%s5122_s7 + $0xc] ss:$16 sps:$4 sm:$0xff]  }
 0x761   : > { %1778 = vmatprep.subr.bf16.mxu0 %v4132_v25  ;;  %v4186_v25 = vld [vmem:[%s5124_s29 + $0x90] sm:$0xff]  }
 0x762   : > { %v1125_v28 = vpop.permute.xlu0 %1124  ;;  %v1344_v30 = vpop.xlane.xlu1 %1343 }
 0x763   : > { %v1130_v29 = vsel %vm1013_vm2, %v1125_v28, 0  ;;  %4223 = vrcp.f32 %v1344_v30  ;;  %v4138_v28 = vld [vmem:[%s5122_s7 + $0x2c] ss:$16 sps:$4 sm:$0xff]   ;;  %v4141_v30 = vld [vmem:[%s5122_s7 + $0x44] ss:$16 sps:$4 sm:$0xff]  }
 0x764   : > { %3777 = vmatpush3.bf16.msra.mxu1 %v1130_v29  ;;  %v4133_v29 = vld [vmem:[%s5122_s7 + $0x20] ss:$16 sps:$4 sm:$0xff]  }
 0x765   : > { %3788 = vmatprep.subr.bf16.mxu1 %v4676_v4 }
 0x766   : > { %v1237_v33 = vpop.permute.xlu1 %1236 }
 0x767   : > { %v1242_v40 = vsel %vm1013_vm2, %v1237_v33, 0  ;;  %v4142_v33 = vld [vmem:[%s5122_s7 + $0x48] ss:$16 sps:$4 sm:$0xff]  }
 0x769   : > { %v4220_v31 = vpop.eup %4219 }
 0x76a   : > { %v1121_v32 = vmul.f32 %v4220_v31, %v4216_v13  ;;  %v4222_v35 = vpop.eup %4221  ;;  %v1349_v41 = vpop.permute.xlu1 %1348  ;;  %v4144_v31 = vld [vmem:[%s5122_s7 + $0x4c] ss:$16 sps:$4 sm:$0xff]  }
 0x76b   : > { %v1234_v3 = vmul.f32 %v4222_v35, %v4214_v20  ;;  %v1354_v45 = vsel %vm1013_vm2, %v1349_v41, 0  ;;  %v4147_v41 = vld [vmem:[%s5122_s7 + $0x64] ss:$16 sps:$4 sm:$0xff]  }
 0x76c   : > { %v1122_v34 = vpack.c.bf16 %v1121_v32, %v1121_v32  ;;  %v4139_v32 = vld [vmem:[%s5122_s7 + $0x40] ss:$16 sps:$4 sm:$0xff]  }
 0x76d   : > { %v1235_v42 = vpack.c.bf16 %v1234_v3, %v1234_v3  ;;  %v4224_v44 = vpop.eup %4223 }
 0x76e   : > { %3779 = vmatmul.mubr.msk.bf16.vlgmr.msra.gmra.mrb[16].mxu1 %vm996_vm7, %v1122_v34  ;;  %v1346_v46 = vmul.f32 %v4224_v44, %v4218_v23  ;;  %v4129_v23 = vld [vmem:[%s5122_s7 + $0x4] ss:$16 sps:$4 sm:$0xff]   ;;  %v4145_v44 = vld [vmem:[%s5122_s7 + $0x60] ss:$16 sps:$4 sm:$0xff]  }
 0x76f   : > { %3789 = vmatpush3.bf16.msra.mxu1 %v1242_v40  ;;  %3790 = vmatprep.mubr.msk.bf16.mxu1 %vm4678_vm0, %v4676_v4 }
 0x770   : > { %3800 = vmatprep.subr.bf16.mxu1 %v4676_v4  ;;  %v1347_v47 = vpack.c.bf16 %v1346_v46, %v1346_v46  ;;  %v4153_v46 = vld [vmem:[%s5122_s7 + $0x84] ss:$16 sps:$4 sm:$0xff]  }
 0x776   : > { %3791 = vmatmul.mubr.msk.bf16.vlgmr.msra.gmra.mrb[20].mxu1 %vm996_vm7, %v1235_v42  ;;  %v4150_v42 = vld [vmem:[%s5122_s7 + $0x6c] ss:$16 sps:$4 sm:$0xff]  }
 0x777   : > { %3801 = vmatpush3.bf16.msra.mxu1 %v1354_v45  ;;  %3802 = vmatprep.mubr.msk.bf16.mxu1 %vm4678_vm0, %v4676_v4  ;;  %v4148_v45 = vld [vmem:[%s5122_s7 + $0x68] ss:$16 sps:$4 sm:$0xff]  }
 0x778   : > { %1737 = vmatprep.subr.bf16.mxu1 %v4129_v23  ;;  %v4184_v23 = vld [vmem:[%s5124_s29 + $0xd0] sm:$0xff]  }
 0x77e   : > { %3803 = vmatmul.mubr.msk.bf16.vlgmr.msra.gmra.mrb[24].mxu1 %vm996_vm7, %v1347_v47  ;;  %v4156_v47 = vld [vmem:[%s5122_s7 + $0x8c] ss:$16 sps:$4 sm:$0xff]  }
 0x77f   : > { %1769 = vmatprep.mubr.bf16.mxu1 %v4677_v26 }
 0x841   : > { %v1166_v57 = vpop.f32.mrb[16].mxu1 }
 0x842   : > { %1397 = vrot.lane.b32.xlu1 %v1166_v57, %s4680_s16  ;;  %v3780_v58 = vpop.f32.mrb[17].mxu1  ;;  %v4168_v57 = vld [vmem:[%s5122_s7 + $0xcc] ss:$16 sps:$4 sm:$0xff]  }
 0x843   : > { %v1169_v59 = vpop.f32.mrb[18].mxu1  ;;  %v4163_v58 = vld [vmem:[%s5122_s7 + $0xc0] ss:$16 sps:$4 sm:$0xff]  }
 0x844   : > { %v3781_v60 = vpop.f32.mrb[19].mxu1  ;;  %v4166_v59 = vld [vmem:[%s5122_s7 + $0xc8] ss:$16 sps:$4 sm:$0xff]  }
 0x845   : > { %v4171_v60 = vld [vmem:[%s5122_s7 + $0xe4] ss:$16 sps:$4 sm:$0xff]  }
 0x849   : > { %v1278_v62 = vpop.f32.mrb[20].mxu1 }
 0x84a   : > { %1401 = vrot.lane.b32.xlu0 %v1278_v62, %s4682_s4  ;;  %v3792_v63 = vpop.f32.mrb[21].mxu1  ;;  %v4169_v62 = vld [vmem:[%s5122_s7 + $0xe0] ss:$16 sps:$4 sm:$0xff]  }
 0x84b   : > { %v1281_v0 = vpop.f32.mrb[22].mxu1  ;;  %v4172_v63 = vld [vmem:[%s5122_s7 + $0xe8] ss:$16 sps:$4 sm:$0xff]  }
 0x84c   : > { %v3793_v2 = vpop.f32.mrb[23].mxu1 }
 0x851   : > { %v1390_v5 = vpop.f32.mrb[24].mxu1 }
 0x852   : > { %1405 = vrot.lane.b32.xlu1 %v1390_v5, %s4679_s18  ;;  %v3804_v6 = vpop.f32.mrb[25].mxu1 }
 0x853   : > { %v1393_v8 = vpop.f32.mrb[26].mxu1  ;;  %v1520_v6 = vsub.s32 2, %v5204_v36 }
 0x854   : > { %v3805_v9 = vpop.f32.mrb[27].mxu1  ;;  %v5378_v8 = vsub.s32 3, %v5204_v36 }
 0x855   : > { %v1521_v9 = vrot.slane %v5210_v38, %v1520_v6 }
 0x8b4   : > { %v1398_v10 = vpop.permute.xlu1 %1397 }
 0x8b5   : > { %v1408_v4 = vsel %vm947_vm1, %v5284_v43, %v1398_v10 }
 0x8bc   : > { %v1402_v11 = vpop.permute.xlu0 %1401 }
 0x8bd   : > { %v1410_v12 = vsel %vm1409_vm8, %v1408_v4, %v1402_v11  ;;  %v1526_v4 = vrot.slane %v5210_v38, %v5378_v8 }
 0x8c4   : > { %v1406_v14 = vpop.permute.xlu1 %1405 }
 0x8c5   : > { %v1412_v15 = vsel %vm1411_vm9, %v1410_v12, %v1406_v14 }
 0x8c6   : > { %v1413_v16 = vpack.c.bf16 %v1412_v15, %v1412_v15 }
 0x8c8   : > { %3823 = vmatmul.mubr.bf16.vlgmr.msra.gmra.mrb[12].mxu0 %v1413_v16  ;;  %v4175_v16 = vld [vmem:[%s5124_s29 + $0x40] sm:$0xff]  }
 0x8c9   : > { %1810 = vmatprep.mubr.bf16.mxu0 %v4677_v26  ;;  %v4127_v26 = vld [vmem:[%s5122_s7] ss:$16 sps:$4 sm:$0xff]   ;;  %1779 = vmatpush1.bf16.msra.mxu0 %v4130_v24 }
 0x8ca   : > { %1738 = vmatpush1.bf16.msra.mxu1 %v4127_v26  ;;  %1780 = vmatprep.subr.bf16.mxu0 %v4138_v28  ;;  %v4183_v26 = vld [vmem:[%s5124_s29 + $0x50] sm:$0xff]   ;;  %v4188_v28 = vld [vmem:[%s5124_s29 + $0xd8] sm:$0xff]  }
 0x8cb   : > { %1739 = vmatprep.subr.bf16.mxu1 %v4135_v27  ;;  %v4185_v24 = vld [vmem:[%s5124_s29 + $0x10] sm:$0xff]   ;;  %v4187_v27 = vld [vmem:[%s5124_s29 + $0x58] sm:$0xff]  }
 0x8ce   : > { %1740 = vmatpush1.bf16.msra.mxu1 %v4133_v29  ;;  %v4189_v29 = vld [vmem:[%s5124_s29 + $0x18] sm:$0xff]  }
 0x8cf   : > { %1741 = vmatprep.subr.bf16.mxu1 %v4141_v30  ;;  %v4191_v30 = vld [vmem:[%s5124_s29 + $0x60] sm:$0xff]  }
 0x8d2   : > { %1742 = vmatpush1.bf16.msra.mxu1 %v4139_v32  ;;  %v4193_v32 = vld [vmem:[%s5124_s29 + $0x20] sm:$0xff]  }
 0x8d3   : > { %1743 = vmatprep.subr.bf16.mxu1 %v4147_v41  ;;  %v4199_v41 = vld [vmem:[%s5124_s29 + $0x70] sm:$0xff]  }
 0x8d6   : > { %1744 = vmatpush1.bf16.msra.mxu1 %v4145_v44  ;;  %v4201_v44 = vld [vmem:[%s5124_s29 + $0x30] sm:$0xff]  }
 0x8d7   : > { %1745 = vmatprep.subr.bf16.mxu1 %v4153_v46  ;;  %v4203_v46 = vld [vmem:[%s5124_s29 + $0x78] sm:$0xff]  }
 0x8da   : > { %1746 = vmatpush1.bf16.msra.mxu1 %v4151_v49  ;;  %v4205_v49 = vld [vmem:[%s5124_s29 + $0x38] sm:$0xff]  }
 0x8db   : > { %1747 = vmatprep.subr.bf16.mxu1 %v4159_v52  ;;  %v1563_v52 = vsub.s32 7, %v5204_v36 }
 0x8de   : > { %1748 = vmatpush1.bf16.msra.mxu1 %v4157_v54  ;;  %v1564_v54 = vrot.slane %v5210_v38, %v1563_v52 }
 0x8df   : > { %1749 = vmatprep.subr.bf16.mxu1 %v4165_v56  ;;  %v1568_v56 = vrot.slane %v5224_v48, %v1563_v52 }
 0x8e2   : > { %1750 = vmatpush1.bf16.msra.mxu1 %v4163_v58 }
 0x8e3   : > { %1751 = vmatprep.subr.bf16.mxu1 %v4171_v60 }
 0x8e6   : > { %1752 = vmatpush1.bf16.msra.mxu1 %v4169_v62 }
 0x8e7   : > { %3660 = vmatprep.subr.bf16.mxu1 %v4175_v16 }
 0x99b   : > { %v1500_v43 = vpop.f32.mrb[12].mxu0 }
 0x99c   : > { %v1501_v19 = vadd.f32 %v1500_v43, %v1417_v18  ;;  %v3824_v20 = vpop.f32.mrb[13].mxu0  ;;  %v4177_v18 = vld [vmem:[%s5124_s29] sm:$0xff]  }
 0x99d   : > { %v1503_v21 = vpop.f32.mrb[14].mxu0  ;;  %v4178_v43 = vld [vmem:[%s5124_s29 + $0x80] sm:$0xff]   ;;  %v4180_v20 = vld [vmem:[%s5124_s29 + $0xc8] sm:$0xff]  }
 0x99e   : > { %v5340_v13 = vadd.f32 %v1501_v19, %v5163_v1  ;;  %v3825_v22 = vpop.f32.mrb[15].mxu0  ;;  %v4136_v1 = vld [vmem:[%s5122_s7 + $0x28] ss:$16 sps:$4 sm:$0xff]  }
 0x99f   : > { %1781 = vmatpush1.bf16.msra.mxu0 %v4136_v1  ;;  %v4179_v19 = vld [vmem:[%s5124_s29 + $0x48] sm:$0xff]   ;;  %v4190_v1 = vld [vmem:[%s5124_s29 + $0x98] sm:$0xff]  }
 0x9a0   : > { %1507 = vadd.xlane.f32.xlu0 %v5340_v13  ;;  %1782 = vmatprep.subr.bf16.mxu0 %v4144_v31  ;;  %v4181_v21 = vld [vmem:[%s5124_s29 + $0x8] sm:$0xff]   ;;  %v4192_v31 = vld [vmem:[%s5124_s29 + $0xe0] sm:$0xff]  }
 0x9a1   : > { %v4182_v22 = vld [vmem:[%s5124_s29 + $0x88] sm:$0xff]  }
 0x9a3   : > { %1783 = vmatpush1.bf16.msra.mxu0 %v4142_v33  ;;  %v4194_v33 = vld [vmem:[%s5124_s29 + $0xa0] sm:$0xff]  }
 0x9a4   : > { %1784 = vmatprep.subr.bf16.mxu0 %v4150_v42  ;;  %v4200_v42 = vld [vmem:[%s5124_s29 + $0xf0] sm:$0xff]  }
 0x9a7   : > { %1785 = vmatpush1.bf16.msra.mxu0 %v4148_v45  ;;  %v4202_v45 = vld [vmem:[%s5124_s29 + $0xb0] sm:$0xff]  }
 0x9a8   : > { %1786 = vmatprep.subr.bf16.mxu0 %v4156_v47  ;;  %v4204_v47 = vld [vmem:[%s5124_s29 + $0xf8] sm:$0xff]  }
 0x9ab   : > { %1787 = vmatpush1.bf16.msra.mxu0 %v4154_v51  ;;  %v4206_v51 = vld [vmem:[%s5124_s29 + $0xb8] sm:$0xff]  }
 0x9ac   : > { %1788 = vmatprep.subr.bf16.mxu0 %v4162_v53  ;;  %v651_v53 = vld [vmem:[%s5158_s30 + $0x18] sm:$0xff] }
 0x9af   : > { %1789 = vmatpush1.bf16.msra.mxu0 %v4160_v55  ;;  %v1572_v55 = vrot.slane %v5228_v50, %v1563_v52 }
 0x9b0   : > { %1790 = vmatprep.subr.bf16.mxu0 %v4168_v57  ;;  %v1576_v57 = vrot.slane %v651_v53, %v1563_v52 }
 0x9b3   : > { %1791 = vmatpush1.bf16.msra.mxu0 %v4166_v59 }
 0x9b4   : > { %1792 = vmatprep.subr.bf16.mxu0 %v4174_v61 }
 0x9b7   : > { %1793 = vmatpush1.bf16.msra.mxu0 %v4172_v63 }
 0x9b8   : > { %3682 = vmatprep.subr.bf16.mxu0 %v4176_v17 }
 0xa2d   : > { %v1508_v34 = vpop.xlane.xlu0 %1507 }
 0xa2e   : > { %v1509_v35 = vmul.f32 0.0078125, %v1508_v34  ;;  %v4195_v34 = vld [vmem:[%s5124_s29 + $0x68] sm:$0xff]  }
 0xa30   : > { %v1510_v40 = vsub.f32 %v5340_v13, %v1509_v35  ;;  %v4196_v35 = vld [vmem:[%s5124_s29 + $0xe8] sm:$0xff]  }
 0xa32   : > { %v1511_v3 = vmul.f32 %v1510_v40, %v1510_v40 }
 0xa34   : > { %1512 = vadd.xlane.f32.xlu1 %v1511_v3  ;;  %v4198_v3 = vld [vmem:[%s5124_s29 + $0xa8] sm:$0xff]  }
 0xac1   : > { %v1513_v0 = vpop.xlane.xlu1 %1512 }
 0xac2   : > { %v1514_v2 = vmul.f32 0.0078125, %v1513_v0 }
 0xac4   : > { %v1515_v5 = vadd.f32 1e-05, %v1514_v2 }
 0xac6   : > { %4225 = vrsqrt.f32 %v1515_v5 }
 0xad0   : > { %v4226_v10 = vpop.eup %4225 }
 0xad1   : > { %v1517_v11 = vmul.f32 %v4226_v10, %v1510_v40  ;;  %v4197_v40 = vld [vmem:[%s5124_s29 + $0x28] sm:$0xff]  }
 0xad3   : > { %v1522_v12 = vmul.f32 %v1521_v9, %v1517_v11 }
 0xad5   : > { %v1527_v14 = vadd.f32 %v1526_v4, %v1522_v12 }
 0xad7   : > { %v1528_v15 = vpack.c.bf16 %v1527_v14, %v1527_v14 }
 0xad9   : > { %1770 = vmatmul.mubr.bf16.vlgmr.msra.gmra.mrb[28].mxu1 %v1528_v15  ;;  %1811 = vmatmul.mubr.bf16.vlgmr.msra.gmra.mrb[16].mxu0 %v1528_v15 }
 0xada   : > { %3661 = vmatpush3.bf16.msra.mxu1 %v4177_v18  ;;  %3683 = vmatpush3.bf16.msra.mxu0 %v4178_v43 }
 0xadb   : > { %3662 = vmatprep.subr.bf16.mxu1 %v4179_v19  ;;  %3684 = vmatprep.subr.bf16.mxu0 %v4180_v20 }
 0xade   : > { %3663 = vmatpush3.bf16.msra.mxu1 %v4181_v21  ;;  %3685 = vmatpush3.bf16.msra.mxu0 %v4182_v22 }
 0xadf   : > { %3664 = vmatprep.subr.bf16.mxu1 %v4183_v26  ;;  %3686 = vmatprep.subr.bf16.mxu0 %v4184_v23 }
 0xae2   : > { %3665 = vmatpush3.bf16.msra.mxu1 %v4185_v24  ;;  %3687 = vmatpush3.bf16.msra.mxu0 %v4186_v25 }
 0xae3   : > { %3666 = vmatprep.subr.bf16.mxu1 %v4187_v27  ;;  %3688 = vmatprep.subr.bf16.mxu0 %v4188_v28 }
 0xae6   : > { %3667 = vmatpush3.bf16.msra.mxu1 %v4189_v29  ;;  %3689 = vmatpush3.bf16.msra.mxu0 %v4190_v1 }
 0xae7   : > { %3668 = vmatprep.subr.bf16.mxu1 %v4191_v30  ;;  %3690 = vmatprep.subr.bf16.mxu0 %v4192_v31 }
 0xaea   : > { %3669 = vmatpush3.bf16.msra.mxu1 %v4193_v32  ;;  %3691 = vmatpush3.bf16.msra.mxu0 %v4194_v33 }
 0xaeb   : > { %3670 = vmatprep.subr.bf16.mxu1 %v4195_v34  ;;  %3692 = vmatprep.subr.bf16.mxu0 %v4196_v35 }
 0xaee   : > { %3671 = vmatpush3.bf16.msra.mxu1 %v4197_v40  ;;  %3693 = vmatpush3.bf16.msra.mxu0 %v4198_v3 }
 0xaef   : > { %3672 = vmatprep.subr.bf16.mxu1 %v4199_v41  ;;  %3694 = vmatprep.subr.bf16.mxu0 %v4200_v42 }
 0xaf2   : > { %3673 = vmatpush3.bf16.msra.mxu1 %v4201_v44  ;;  %3695 = vmatpush3.bf16.msra.mxu0 %v4202_v45 }
 0xaf3   : > { %3674 = vmatprep.subr.bf16.mxu1 %v4203_v46  ;;  %3696 = vmatprep.subr.bf16.mxu0 %v4204_v47 }
 0xaf6   : > { %3675 = vmatpush3.bf16.msra.mxu1 %v4205_v49  ;;  %3697 = vmatpush3.bf16.msra.mxu0 %v4206_v51 }
 0xbac   : > { %v1771_v58 = vpop.f32.mrb[28].mxu1  ;;  %v1812_v59 = vpop.f32.mrb[16].mxu0 }
 0xbad   : > { %v1772_v60 = vadd.f32 %v1771_v58, %v1564_v54  ;;  %v1813_v61 = vadd.f32 %v1812_v59, %v1572_v55  ;;  %v1773_v62 = vpop.f32.mrb[29].mxu1  ;;  %v1814_v63 = vpop.f32.mrb[17].mxu0 }
 0xbae   : > { %v1774_v0 = vadd.f32 %v1773_v62, %v1568_v56  ;;  %v1815_v2 = vadd.f32 %v1814_v63, %v1576_v57  ;;  %v1775_v5 = vpop.f32.mrb[30].mxu1  ;;  %v1816_v9 = vpop.f32.mrb[18].mxu0  ;;  %v2198_v57 = vsub.s32 5, %v5204_v36 }
 0xbaf   : > { %v1819_v10 = vmul.f32 %v1772_v60, %v1772_v60  ;;  %v1821_v11 = vmul.f32 %v1813_v61, %v1813_v61  ;;  %v1776_v4 = vpop.f32.mrb[31].mxu1  ;;  %v1817_v12 = vpop.f32.mrb[19].mxu0 }
 0xbb0   : > { %v1820_v14 = vmul.f32 %v1774_v0, %v1774_v0  ;;  %v1822_v15 = vmul.f32 %v1815_v2, %v1815_v2  ;;  %v2199_v5 = vrot.slane %v5210_v38, %v2198_v57  ;;  %v4237_v4 = vld [vmem:[%s5775_s0] ss:$12 sps:$4 sm:$0xff] (!%p3559_p8)   ;;  %v4683_v12 = vmov (!%p3559_p8), 0.0   ;;  %v4238_v38 = vld [vmem:[%s5775_s0 + $0x8] ss:$12 sps:$4 sm:$0xff] (!%p3559_p8)  }
 0xbb1   : > { %v1823_v50 = vmul.f32 %v1819_v10, %v1772_v60  ;;  %v1825_v16 = vmul.f32 %v1821_v11, %v1813_v61  ;;  %v4235_v11 = vld [vmem:[%s5774_s26 + $0x4] ss:$12 sps:$4 sm:$0xff] (!%p3559_p8)   ;;  %3826 = vmatprep.subr.bf16.mxu1 (!%p3559_p8), %v4683_v12 }
 0xbb2   : > { %v1824_v48 = vmul.f32 %v1820_v14, %v1774_v0  ;;  %v1826_v17 = vmul.f32 %v1822_v15, %v1815_v2  ;;  %2420 = vmatprep.subr.bf16.mxu0 (!%p3559_p8), %v4235_v11  ;;  %v4241_v14 = vld [vmem:[%s5775_s0 + $0x18] ss:$12 sps:$4 sm:$0xff] (!%p3559_p8)   ;;  %v4242_v15 = vld [vmem:[%s5775_s0 + $0x20] ss:$12 sps:$4 sm:$0xff] (!%p3559_p8)  }
 0xbb3   : > { %v1827_v18 = vmul.f32 0.044715, %v1823_v50  ;;  %v1829_v43 = vmul.f32 0.044715, %v1825_v16 }
 0xbb4   : > { %v1828_v19 = vmul.f32 0.044715, %v1824_v48  ;;  %v1830_v20 = vmul.f32 0.044715, %v1826_v17 }
 0xbb5   : > { %v1831_v21 = vadd.f32 %v1827_v18, %v1772_v60  ;;  %v1833_v22 = vadd.f32 %v1829_v43, %v1813_v61  ;;  %v4243_v18 = vld [vmem:[%s5775_s0 + $0x34] ss:$12 sps:$4 sm:$0xff] (!%p3559_p8)   ;;  %v4245_v43 = vld [vmem:[%s5775_s0 + $0x30] ss:$12 sps:$4 sm:$0xff] (!%p3559_p8)  }
 0xbb6   : > { %v1832_v26 = vadd.f32 %v1828_v19, %v1774_v0  ;;  %v1834_v23 = vadd.f32 %v1830_v20, %v1815_v2  ;;  %v4246_v19 = vld [vmem:[%s5775_s0 + $0x38] ss:$12 sps:$4 sm:$0xff] (!%p3559_p8)  }
 0xbb7   : > { %v1835_v24 = vmul.f32 0.7978846, %v1831_v21  ;;  %v1837_v25 = vmul.f32 0.7978846, %v1833_v22  ;;  %v4247_v20 = vld [vmem:[%s5775_s0 + $0x4c] ss:$12 sps:$4 sm:$0xff] (!%p3559_p8)  }
 0xbb8   : > { %v1836_v27 = vmul.f32 0.7978846, %v1832_v26  ;;  %v1838_v28 = vmul.f32 0.7978846, %v1834_v23  ;;  %v4249_v21 = vld [vmem:[%s5775_s0 + $0x48] ss:$12 sps:$4 sm:$0xff] (!%p3559_p8)  }
 0xbb9   : > { %4227 = vtanh.f32 %v1835_v24  ;;  %v4250_v22 = vld [vmem:[%s5775_s0 + $0x50] ss:$12 sps:$4 sm:$0xff] (!%p3559_p8)   ;;  %v4253_v23 = vld [vmem:[%s5775_s0 + $0x60] ss:$12 sps:$4 sm:$0xff] (!%p3559_p8)   ;;  %v4254_v24 = vld [vmem:[%s5775_s0 + $0x68] ss:$12 sps:$4 sm:$0xff] (!%p3559_p8)  }
 0xbba   : > { %4229 = vtanh.f32 %v1837_v25  ;;  %v4251_v26 = vld [vmem:[%s5775_s0 + $0x64] ss:$12 sps:$4 sm:$0xff] (!%p3559_p8)   ;;  %v4255_v25 = vld [vmem:[%s5775_s0 + $0x7c] ss:$12 sps:$4 sm:$0xff] (!%p3559_p8)  }
 0xbbb   : > { %4231 = vtanh.f32 %v1836_v27  ;;  %v4257_v27 = vld [vmem:[%s5775_s0 + $0x78] ss:$12 sps:$4 sm:$0xff] (!%p3559_p8)  }
 0xbbc   : > { %4233 = vtanh.f32 %v1838_v28  ;;  %v4258_v28 = vld [vmem:[%s5775_s0 + $0x80] ss:$12 sps:$4 sm:$0xff] (!%p3559_p8)  }
 0xbc3   : > { %v4228_v29 = vpop.eup %4227 }
 0xbc4   : > { %v4230_v1 = vpop.eup %4229  ;;  %v1843_v30 = vadd.f32 1.0, %v4228_v29  ;;  %v4259_v29 = vld [vmem:[%s5775_s0 + $0x94] ss:$12 sps:$4 sm:$0xff] (!%p3559_p8)  }
 0xbc5   : > { %v4232_v31 = vpop.eup %4231  ;;  %v1845_v32 = vadd.f32 1.0, %v4230_v1  ;;  %v4684_v1 = vmov (!%p3559_p8), 0  }
 0xbc6   : > { %v4234_v33 = vpop.eup %4233  ;;  %v1844_v34 = vadd.f32 1.0, %v4232_v31  ;;  %v1847_v35 = vmul.f32 0.5, %v1843_v30  ;;  %v4261_v30 = vld [vmem:[%s5775_s0 + $0x90] ss:$12 sps:$4 sm:$0xff] (!%p3559_p8)   ;;  %v4262_v31 = vld [vmem:[%s5775_s0 + $0x98] ss:$12 sps:$4 sm:$0xff] (!%p3559_p8)  }
 0xbc7   : > { %v1846_v40 = vadd.f32 1.0, %v4234_v33  ;;  %v1849_v3 = vmul.f32 0.5, %v1845_v32  ;;  %v4263_v32 = vld [vmem:[%s5775_s0 + $0xac] ss:$12 sps:$4 sm:$0xff] (!%p3559_p8)   ;;  %v4265_v33 = vld [vmem:[%s5775_s0 + $0xa8] ss:$12 sps:$4 sm:$0xff] (!%p3559_p8)  }
 0xbc8   : > { %v1848_v41 = vmul.f32 0.5, %v1844_v34  ;;  %v1851_v44 = vmul.f32 %v1847_v35, %v1772_v60  ;;  %v4266_v34 = vld [vmem:[%s5775_s0 + $0xb0] ss:$12 sps:$4 sm:$0xff] (!%p3559_p8)  }
 0xbc9   : > { %v1850_v42 = vmul.f32 0.5, %v1846_v40  ;;  %v1853_v46 = vmul.f32 %v1849_v3, %v1813_v61 }
 0xbca   : > { %v1852_v45 = vmul.f32 %v1848_v41, %v1774_v0  ;;  %v1855_v52 = vpack.c.bf16 %v1851_v44, %v1851_v44  ;;  %v5511_v41 = vld [vmem:[#allocation11] sm:$0xff] (!%p3559_p8) }
 0xbcb   : > { %v1854_v47 = vmul.f32 %v1850_v42, %v1815_v2  ;;  %v1857_v53 = vpack.c.bf16 %v1853_v46, %v1853_v46  ;;  %v2223_v42 = vrot.slane (!%p3559_p8), %v5511_v41, %v5207_v37  ;;  %v2228_v46 = vrot.slane (!%p3559_p8), %v5511_v41, %v672_v39 }
 0xbcc   : > { %v1856_v49 = vpack.c.bf16 %v1852_v45, %v1852_v45  ;;  %v2283_v39 = vrot.slane (!%p3559_p8), %v5511_v41, %v5378_v8 }
 0xbcd   : > { %v1858_v51 = vpack.c.bf16 %v1854_v47, %v1854_v47 }
 0xbce   : > { %2147 = vmatprep.mubr.bf16.mxu1 %v1856_v49 }
 0xbcf   : > { %2187 = vmatprep.mubr.bf16.mxu0 %v1858_v51  ;;  %2148 = vmatmul.mubr.bf16.vlgmr.msra.gmra.mrb[32].mxu1 %v1855_v52  ;;  %v2208_v52 = vld [vmem:[#allocation11 + $0x10] sm:$0xff] (!%p3559_p8) }
 0xbd0   : > { %2188 = vmatmul.mubr.bf16.vlgmr.msra.gmra.mrb[20].mxu0 %v1857_v53  ;;  %3827 = vmatpush3.bf16.msra.mxu1 (!%p3559_p8), %v4238_v38  ;;  %v2207_v53 = vld [vmem:[#allocation11 + $0x8] sm:$0xff] (!%p3559_p8) }
 0xbd1   : > { %2421 = vmatpush1.bf16.msra.mxu0 (!%p3559_p8), %v4237_v4  ;;  %3828 = vmatprep.subr.bf16.mxu1 (!%p3559_p8), %v4683_v12 }
 0xbd2   : > { %2452 = vmatprep.mubr.bf16.mxu0 (!%p3559_p8), %v4684_v1  ;;  %3842 = vmatprep.mubr.msk.bf16.mxu1 (!%p3559_p8), %vm4685_vm10, %v4683_v12 }
 0xbd4   : > { %3829 = vmatpush3.bf16.msra.mxu1 (!%p3559_p8), %v4242_v15 }
 0xbd5   : > { %3830 = vmatprep.subr.bf16.mxu1 (!%p3559_p8), %v4683_v12 }
 0xbd8   : > { %3831 = vmatpush3.bf16.msra.mxu1 (!%p3559_p8), %v4246_v19 }
 0xbd9   : > { %3832 = vmatprep.subr.bf16.mxu1 (!%p3559_p8), %v4683_v12 }
 0xbdc   : > { %3833 = vmatpush3.bf16.msra.mxu1 (!%p3559_p8), %v4250_v22 }
 0xbdd   : > { %3834 = vmatprep.subr.bf16.mxu1 (!%p3559_p8), %v4683_v12 }
 0xbe0   : > { %3835 = vmatpush3.bf16.msra.mxu1 (!%p3559_p8), %v4254_v24 }
 0xbe1   : > { %3836 = vmatprep.subr.bf16.mxu1 (!%p3559_p8), %v4683_v12 }
 0xbe4   : > { %3837 = vmatpush3.bf16.msra.mxu1 (!%p3559_p8), %v4258_v28 }
 0xbe5   : > { %3838 = vmatprep.subr.bf16.mxu1 (!%p3559_p8), %v4683_v12 }
 0xbe8   : > { %3839 = vmatpush3.bf16.msra.mxu1 (!%p3559_p8), %v4262_v31 }
 0xbe9   : > { %3840 = vmatprep.subr.bf16.mxu1 (!%p3559_p8), %v4683_v12 }
 0xbec   : > { %3841 = vmatpush3.bf16.msra.mxu1 (!%p3559_p8), %v4266_v34 }
 0xbed   : > { %3852 = vmatprep.subr.bf16.mxu1 (!%p3559_p8), %v4683_v12 }
 0xca2   : > { %v3676_v54 = vpop.f32.mrb[32].mxu1 }
 0xca3   : > { %v3698_v55 = vpop.f32.mrb[20].mxu0  ;;  %v3677_v56 = vpop.f32.mrb[33].mxu1 }
 0xca4   : > { %v3678_v58 = vadd.f32 %v3677_v56, %v3676_v54  ;;  %v3699_v59 = vpop.f32.mrb[21].mxu0  ;;  %v3679_v62 = vpop.f32.mrb[34].mxu1  ;;  %v2291_v54 = vrot.slane (!%p3559_p8), %v2208_v52, %v5378_v8 }
 0xca5   : > { %v3700_v60 = vadd.f32 %v3699_v59, %v3698_v55  ;;  %v3701_v63 = vpop.f32.mrb[22].mxu0  ;;  %v3680_v61 = vpop.f32.mrb[35].mxu1  ;;  %v2287_v55 = vrot.slane (!%p3559_p8), %v2207_v53, %v5378_v8 }
 0xca6   : > { %v3702_v0 = vpop.f32.mrb[23].mxu0 }
 0xca7   : > { %v2190_v2 = vadd.f32 %v3700_v60, %v3678_v58  ;;  %2205 = sbr.rel (%p3559_p8) target bundleno = 5245 (0x147d), region = 100 }
 0xca9   : > { %v2195_v9 = vadd.f32 %v2190_v2, %v5340_v13  ;;  %v4239_v13 = vld [vmem:[%s5775_s0 + $0x1c] ss:$12 sps:$4 sm:$0xff] (!%p3559_p8)  }
 0xcaa   : > { %2422 = vmatprep.subr.bf16.mxu0 (!%p3559_p8), %v4239_v13 }
 0xcab   : > { %v2200_v10 = vadd.f32 %v2199_v5, %v2195_v9  ;;  %2423 = vmatpush1.bf16.msra.mxu0 (!%p3559_p8), %v4241_v14 }
 0xcac   : > { %2424 = vmatprep.subr.bf16.mxu0 (!%p3559_p8), %v4243_v18 }
 0xcad   : > { %2201 = vst [vmem:[#allocation2] sm:$0xff] %v2200_v10  ;;  %2209 = vadd.xlane.f32.xlu0 (!%p3559_p8), %v2200_v10 }
 0xcaf   : > { %2425 = vmatpush1.bf16.msra.mxu0 %v4245_v43  ;;  %v4689_v43 = vmov -1e+09  }
 0xcb0   : > { %2426 = vmatprep.subr.bf16.mxu0 %v4247_v20  ;;  %v2230_v19 = vsel %vm634_vm3, 0.0, %v4689_v43 }
 0xcb1   : > { %v2554_v20 = vrot.slane %v2230_v19, %v5207_v37 }
 0xcb3   : > { %2427 = vmatpush1.bf16.msra.mxu0 %v4249_v21 }
 0xcb4   : > { %2428 = vmatprep.subr.bf16.mxu0 %v4251_v26 }
 0xcb7   : > { %2429 = vmatpush1.bf16.msra.mxu0 %v4253_v23 }
 0xcb8   : > { %2430 = vmatprep.subr.bf16.mxu0 %v4255_v25 }
 0xcbb   : > { %2431 = vmatpush1.bf16.msra.mxu0 %v4257_v27 }
 0xcbc   : > { %2432 = vmatprep.subr.bf16.mxu0 %v4259_v29 }
 0xcbf   : > { %2433 = vmatpush1.bf16.msra.mxu0 %v4261_v30 }
 0xcc0   : > { %2434 = vmatprep.subr.bf16.mxu0 %v4263_v32 }
 0xcc3   : > { %2435 = vmatpush1.bf16.msra.mxu0 %v4265_v33 }
 0xcc4   : > { %3846 = vmatprep.subr.bf16.mxu0 %v4683_v12 }
 0xd3a   : > { %v2210_v50 = vpop.xlane.xlu0 %2209 }
 0xd3b   : > { %v2211_v16 = vmul.f32 0.0078125, %v2210_v50 }
 0xd3d   : > { %v2212_v48 = vsub.f32 %v2200_v10, %v2211_v16 }
 0xd3f   : > { %v2213_v17 = vmul.f32 %v2212_v48, %v2212_v48 }
 0xd41   : > { %2214 = vadd.xlane.f32.xlu0 %v2213_v17 }
 0xdce   : > { %v2215_v35 = vpop.xlane.xlu0 %2214 }
 0xdcf   : > { %v2216_v40 = vmul.f32 0.0078125, %v2215_v35 }
 0xdd1   : > { %v2217_v3 = vadd.f32 1e-05, %v2216_v40 }
 0xdd3   : > { %4299 = vrsqrt.f32 %v2217_v3 }
 0xddd   : > { %v4300_v44 = vpop.eup %4299 }
 0xdde   : > { %v2219_v45 = vmul.f32 %v4300_v44, %v2212_v48 }
 0xde0   : > { %v2224_v47 = vmul.f32 %v2223_v42, %v2219_v45 }
 0xde2   : > { %v2229_v49 = vadd.f32 %v2228_v46, %v2224_v47 }
 0xde4   : > { %v2279_v51 = vpack.c.bf16 %v2229_v49, %v2229_v49 }
 0xde6   : > { %2453 = vmatmul.mubr.bf16.vlgmr.msra.gmra.mrb[0].mxu0 %v2279_v51  ;;  %3843 = vmatmul.mubr.bf16.vlgmr.msra.gmra.mrb[0].mxu1 %v2279_v51 }
 0xde7   : > { %3848 = vmatprep.mubr.msk.bf16.mxu0 %vm4685_vm10, %v4683_v12  ;;  %3854 = vmatprep.mubr.msk.bf16.mxu1 %vm4685_vm10, %v4683_v12 }
 0xeb9   : > { %v2454_v56 = vpop.f32.mrb[0].mxu0  ;;  %v2495_v57 = vpop.f32.mrb[0].mxu1 }
 0xeba   : > { %v2496_v58 = vadd.f32 %v2495_v57, %v2291_v54  ;;  %v2456_v59 = vpop.f32.mrb[1].mxu0  ;;  %v3844_v62 = vpop.f32.mrb[1].mxu1  ;;  %v2455_v10 = vadd.f32 %v2454_v56, %v2283_v39 }
 0xebb   : > { %v2457_v60 = vadd.f32 %v2456_v59, %v2287_v55  ;;  %v2458_v63 = vpop.f32.mrb[2].mxu0  ;;  %v2498_v61 = vpop.f32.mrb[2].mxu1 }
 0xebc   : > { %v5526_v0 = vpack.c.bf16 %v2496_v58, %v2496_v58  ;;  %v2459_v2 = vpop.f32.mrb[3].mxu0  ;;  %v3845_v5 = vpop.f32.mrb[3].mxu1  ;;  %v2501_v4 = vpack.c.bf16 %v2455_v10, %v2455_v10 }
 0xebd   : > { %v2502_v9 = vpack.c.bf16 %v2457_v60, %v2457_v60 }
 0xebe   : > { %v2574_v11 = vsel %vm1013_vm2, %v5526_v0, 0 }
 0xebf   : > { %3853 = vmatpush3.bf16.msra.mxu1 %v2574_v11  ;;  %2733 = vrot.lane.b32.xlu0 %v2502_v9, %s4686_s17  ;;  %v2507_v8 = vsel %vm947_vm1, %v2502_v9, 0 }
 0xec0   : > { %2620 = vrot.lane.b32.xlu1 %v2502_v9, %s4687_s9  ;;  %3847 = vmatpush3.bf16.xpose.msra.mxu0 %v2507_v8 }
 0xec1   : > { %3858 = vmatprep.subr.bf16.mxu0 %v4683_v12  ;;  %3864 = vmatprep.subr.bf16.mxu1 %v4683_v12 }
 0xec4   : > { %2617 = vrot.lane.b32.xlu1 %v2501_v4, %s4687_s9 }
 0xec7   : > { %3849 = vmatmul.mubr.msk.bf16.vlgmr.msra.gmra.mrb[4].mxu0 %vm947_vm1, %v2501_v4 }
 0xec8   : > { %2731 = vrot.lane.b32.xlu1 %v2501_v4, %s4686_s17  ;;  %3860 = vmatprep.mubr.msk.bf16.mxu0 %vm4685_vm10, %v4683_v12 }
 0xecc   : > { %2845 = vrot.lane.b32.xlu1 %v2502_v9, %s4688_s28 }
 0xed0   : > { %2843 = vrot.lane.b32.xlu1 %v2501_v4, %s4688_s28 }
 0xf31   : > { %v2734_v15 = vpop.permute.xlu0 %2733 }
 0xf32   : > { %v2621_v38 = vpop.permute.xlu1 %2620  ;;  %v2739_v16 = vsel %vm947_vm1, %v2734_v15, 0 }
 0xf33   : > { %v2626_v13 = vsel %vm947_vm1, %v2621_v38, 0 }
 0xf34   : > { %3859 = vmatpush3.bf16.xpose.msra.mxu0 %v2626_v13 }
 0xf35   : > { %3870 = vmatprep.subr.bf16.mxu0 %v4683_v12 }
 0xf36   : > { %v2618_v14 = vpop.permute.xlu1 %2617 }
 0xf3a   : > { %v2732_v50 = vpop.permute.xlu1 %2731 }
 0xf3b   : > { %3861 = vmatmul.mubr.msk.bf16.vlgmr.msra.gmra.mrb[8].mxu0 %vm947_vm1, %v2618_v14 }
 0xf3c   : > { %3871 = vmatpush3.bf16.xpose.msra.mxu0 %v2739_v16  ;;  %3872 = vmatprep.mubr.msk.bf16.mxu0 %vm4685_vm10, %v4683_v12 }
 0xf3d   : > { %3882 = vmatprep.subr.bf16.mxu0 %v4683_v12 }
 0xf3e   : > { %v2846_v48 = vpop.permute.xlu1 %2845 }
 0xf3f   : > { %v2851_v17 = vsel %vm947_vm1, %v2846_v48, 0 }
 0xf42   : > { %v2844_v18 = vpop.permute.xlu1 %2843 }
 0xf43   : > { %3873 = vmatmul.mubr.msk.bf16.vlgmr.msra.gmra.mrb[12].mxu0 %vm947_vm1, %v2732_v50 }
 0xf44   : > { %3883 = vmatpush3.bf16.xpose.msra.mxu0 %v2851_v17  ;;  %3884 = vmatprep.mubr.msk.bf16.mxu0 %vm4685_vm10, %v4683_v12 }
 0xf45   : > { %3894 = vmatprep.subr.bf16.mxu0 %v4683_v12 }
 0xf4b   : > { %3885 = vmatmul.mubr.msk.bf16.vlgmr.msra.gmra.mrb[16].mxu0 %vm947_vm1, %v2844_v18 }
 0xf4c   : > { %3910 = vmatprep.mubr.msk.bf16.mxu0 %vm4685_vm10, %v4683_v12 }
 0xf9a   : > { %v2543_v21 = vpop.f32.mrb[4].mxu0 }
 0xf9b   : > { %v2549_v22 = vmul.f32 0.17677669, %v2543_v21  ;;  %v3850_v26 = vpop.f32.mrb[5].mxu0 }
 0xf9c   : > { %v2546_v23 = vpop.f32.mrb[6].mxu0 }
 0xf9d   : > { %v3851_v24 = vpop.f32.mrb[7].mxu0  ;;  %v2556_v25 = vadd.f32 %v2554_v20, %v2549_v22 }
 0xf9f   : > { %v2557_v27 = vsel %vm996_vm7, %v2556_v25, -inf }
 0xfa0   : > { %2558 = vmax.xlane.f32.xlu1 %v2557_v27 }
0x100e   : > { %v2662_v28 = vpop.f32.mrb[8].mxu0 }
0x100f   : > { %v2668_v29 = vmul.f32 0.17677669, %v2662_v28  ;;  %v3862_v30 = vpop.f32.mrb[9].mxu0 }
0x1010   : > { %v2665_v31 = vpop.f32.mrb[10].mxu0 }
0x1011   : > { %v3863_v32 = vpop.f32.mrb[11].mxu0  ;;  %v2669_v33 = vadd.f32 %v2668_v29, %v2554_v20 }
0x1013   : > { %v2670_v7 = vsel %vm996_vm7, %v2669_v33, -inf }
0x1014   : > { %2671 = vmax.xlane.f32.xlu0 %v2670_v7 }
0x1016   : > { %v2775_v34 = vpop.f32.mrb[12].mxu0 }
0x1017   : > { %v2781_v37 = vmul.f32 0.17677669, %v2775_v34  ;;  %v3874_v35 = vpop.f32.mrb[13].mxu0 }
0x1018   : > { %v2778_v40 = vpop.f32.mrb[14].mxu0  ;;  %v4268_v35 = vld [vmem:[#allocation12 + $0x8] sm:$0xff]  }
0x1019   : > { %v3875_v3 = vpop.f32.mrb[15].mxu0  ;;  %v2782_v42 = vadd.f32 %v2781_v37, %v2554_v20  ;;  %v4267_v37 = vld [vmem:[#allocation12] sm:$0xff]  }
0x101a   : > { %3895 = vmatpush3.bf16.msra.mxu0 %v4267_v37 }
0x101b   : > { %v2783_v44 = vsel %vm996_vm7, %v2782_v42, -inf  ;;  %3896 = vmatprep.subr.bf16.mxu0 %v4683_v12 }
0x101c   : > { %2784 = vmax.xlane.f32.xlu1 %v2783_v44  ;;  %v4269_v44 = vld [vmem:[#allocation12 + $0x10] sm:$0xff]  }
0x101e   : > { %v2887_v45 = vpop.f32.mrb[16].mxu0  ;;  %3897 = vmatpush3.bf16.msra.mxu0 %v4268_v35 }
0x101f   : > { %v2893_v46 = vmul.f32 0.17677669, %v2887_v45  ;;  %v3886_v47 = vpop.f32.mrb[17].mxu0  ;;  %3898 = vmatprep.subr.bf16.mxu0 %v4683_v12 }
0x1020   : > { %v2890_v49 = vpop.f32.mrb[18].mxu0 }
0x1021   : > { %v3887_v51 = vpop.f32.mrb[19].mxu0  ;;  %v2894_v52 = vadd.f32 %v2893_v46, %v2554_v20 }
0x1022   : > { %3899 = vmatpush3.bf16.msra.mxu0 %v4269_v44  ;;  %v4271_v51 = vld [vmem:[#allocation12 + $0x20] sm:$0xff]  }
0x1023   : > { %v2895_v53 = vsel %vm996_vm7, %v2894_v52, -inf  ;;  %3900 = vmatprep.subr.bf16.mxu0 %v4683_v12 }
0x1024   : > { %2896 = vmax.xlane.f32.xlu1 %v2895_v53  ;;  %v4272_v53 = vld [vmem:[#allocation12 + $0x28] sm:$0xff]  }
0x102d   : > { %v2559_v54 = vpop.xlane.xlu1 %2558 }
0x102e   : > { %v2560_v55 = vsub.f32 %v2556_v25, %v2559_v54  ;;  %v4273_v54 = vld [vmem:[#allocation12 + $0x30] sm:$0xff]  }
0x1030   : > { %v2561_v56 = vmul.f32 1.442695, %v2560_v55  ;;  %v4274_v55 = vld [vmem:[#allocation12 + $0x38] sm:$0xff]  }
0x1032   : > { %4301 = vpow2.f32 %v2561_v56  ;;  %v4275_v56 = vld [vmem:[#allocation14] ss:$8 sps:$4 sm:$0xff]  }
0x103c   : > { %v4302_v57 = vpop.eup %4301 }
0x103d   : > { %v2563_v39 = vsel %vm996_vm7, %v4302_v57, 0.0 }
0x103e   : > { %2564 = vadd.xlane.f32.xlu0 %v2563_v39  ;;  %v4280_v39 = vld [vmem:[#allocation14 + $0x14] ss:$8 sps:$4 sm:$0xff]  }
0x10a1   : > { %v2672_v58 = vpop.xlane.xlu0 %2671 }
0x10a2   : > { %v2673_v59 = vsub.f32 %v2669_v33, %v2672_v58  ;;  %v4278_v58 = vld [vmem:[#allocation14 + $0x10] ss:$8 sps:$4 sm:$0xff]  }
0x10a4   : > { %v2674_v62 = vmul.f32 1.442695, %v2673_v59  ;;  %v4283_v59 = vld [vmem:[#allocation14 + $0x24] ss:$8 sps:$4 sm:$0xff]  }
0x10a6   : > { %4303 = vpow2.f32 %v2674_v62  ;;  %v4281_v62 = vld [vmem:[#allocation14 + $0x20] ss:$8 sps:$4 sm:$0xff]  }
0x10a9   : > { %v2785_v60 = vpop.xlane.xlu1 %2784 }
0x10aa   : > { %v2786_v63 = vsub.f32 %v2782_v42, %v2785_v60  ;;  %v4286_v60 = vld [vmem:[#allocation14 + $0x34] ss:$8 sps:$4 sm:$0xff]  }
0x10ac   : > { %v2787_v61 = vmul.f32 1.442695, %v2786_v63 }
0x10ae   : > { %4305 = vpow2.f32 %v2787_v61 }
0x10b0   : > { %v4304_v2 = vpop.eup %4303 }
0x10b1   : > { %v2676_v5 = vsel %vm996_vm7, %v4304_v2, 0.0  ;;  %v2897_v8 = vpop.xlane.xlu1 %2896 }
0x10b2   : > { %2677 = vadd.xlane.f32.xlu1 %v2676_v5  ;;  %v2898_v4 = vsub.f32 %v2894_v52, %v2897_v8  ;;  %v4290_v8 = vld [vmem:[#allocation14 + $0x50] ss:$8 sps:$4 sm:$0xff]  }
0x10b4   : > { %v2899_v38 = vmul.f32 1.442695, %v2898_v4  ;;  %v4295_v4 = vld [vmem:[#allocation14 + $0x64] ss:$8 sps:$4 sm:$0xff]  }
0x10b8   : > { %v4306_v9 = vpop.eup %4305 }
0x10b9   : > { %v2789_v10 = vsel %vm996_vm7, %v4306_v9, 0.0 }
0x10ba   : > { %2790 = vadd.xlane.f32.xlu0 %v2789_v10  ;;  %v4287_v10 = vld [vmem:[#allocation14 + $0x40] ss:$8 sps:$4 sm:$0xff]  }
0x10c3   : > { %2795 = vrot.lane.b32.xlu1 %v5526_v0, %s4686_s17 }
0x10cb   : > { %v2565_v11 = vpop.xlane.xlu0 %2564 }
0x10cc   : > { %4307 = vrcp.f32 %v2565_v11  ;;  %v4292_v11 = vld [vmem:[#allocation14 + $0x54] ss:$8 sps:$4 sm:$0xff]  }
0x10cd   : > { %4309 = vpow2.f32 %v2899_v38  ;;  %v4293_v38 = vld [vmem:[#allocation14 + $0x60] ss:$8 sps:$4 sm:$0xff]  }
0x10d0   : > { %2683 = vrot.lane.b32.xlu0 %v5526_v0, %s4687_s9 }
0x10d6   : > { %v4308_v13 = vpop.eup %4307 }
0x10d7   : > { %v2567_v14 = vmul.f32 %v4308_v13, %v4302_v57  ;;  %v4310_v50 = vpop.eup %4309  ;;  %v4277_v57 = vld [vmem:[#allocation14 + $0x4] ss:$8 sps:$4 sm:$0xff]  }
0x10d8   : > { %v2901_v16 = vsel %vm996_vm7, %v4310_v50, 0.0 }
0x10d9   : > { %v2568_v15 = vpack.c.bf16 %v2567_v14, %v2567_v14 }
0x10db   : > { %3855 = vmatmul.mubr.msk.bf16.vlgmr.msra.gmra.mrb[4].mxu1 %vm996_vm7, %v2568_v15 }
0x10dc   : > { %3866 = vmatprep.mubr.msk.bf16.mxu1 %vm4685_vm10, %v4683_v12 }
0x10e7   : > { %2902 = vadd.xlane.f32.xlu1 %v2901_v16 }
0x10f8   : > { %2907 = vrot.lane.b32.xlu1 %v5526_v0, %s4688_s28 }
0x113f   : > { %v2678_v48 = vpop.xlane.xlu1 %2677 }
0x1140   : > { %4311 = vrcp.f32 %v2678_v48 }
0x1143   : > { %v2796_v21 = vpop.permute.xlu1 %2795 }
0x1144   : > { %v2801_v26 = vsel %vm1013_vm2, %v2796_v21, 0 }
0x1147   : > { %v2791_v17 = vpop.xlane.xlu0 %2790 }
0x1148   : > { %4313 = vrcp.f32 %v2791_v17 }
0x114a   : > { %v4312_v18 = vpop.eup %4311 }
0x114b   : > { %v2684_v43 = vpop.permute.xlu0 %2683  ;;  %v2680_v19 = vmul.f32 %v4312_v18, %v4304_v2  ;;  %v4298_v18 = vld [vmem:[#allocation14 + $0x74] ss:$8 sps:$4 sm:$0xff]  }
0x114c   : > { %v2689_v20 = vsel %vm1013_vm2, %v2684_v43, 0  ;;  %v4296_v43 = vld [vmem:[#allocation14 + $0x70] ss:$8 sps:$4 sm:$0xff]  }
0x114d   : > { %3865 = vmatpush3.bf16.msra.mxu1 %v2689_v20  ;;  %v2681_v22 = vpack.c.bf16 %v2680_v19, %v2680_v19  ;;  %v2974_v19 = vrot.slane %v5511_v41, %v1520_v6 }
0x114e   : > { %3876 = vmatprep.subr.bf16.mxu1 %v4683_v12 }
0x1150   : > { %3867 = vmatmul.mubr.msk.bf16.vlgmr.msra.gmra.mrb[8].mxu1 %vm996_vm7, %v2681_v22 }
0x1151   : > { %3877 = vmatpush3.bf16.msra.mxu1 %v2801_v26  ;;  %3878 = vmatprep.mubr.msk.bf16.mxu1 %vm4685_vm10, %v4683_v12 }
0x1152   : > { %v4314_v0 = vpop.eup %4313  ;;  %3888 = vmatprep.subr.bf16.mxu1 %v4683_v12 }
0x1153   : > { %v2793_v23 = vmul.f32 %v4314_v0, %v4306_v9  ;;  %v4289_v9 = vld [vmem:[#allocation14 + $0x44] ss:$8 sps:$4 sm:$0xff]  }
0x1155   : > { %v2794_v24 = vpack.c.bf16 %v2793_v23, %v2793_v23 }
0x1158   : > { %3879 = vmatmul.mubr.msk.bf16.vlgmr.msra.gmra.mrb[12].mxu1 %vm996_vm7, %v2794_v24 }
0x1159   : > { %3890 = vmatprep.mubr.msk.bf16.mxu1 %vm4685_vm10, %v4683_v12 }
0x1174   : > { %v2903_v25 = vpop.xlane.xlu1 %2902 }
0x1175   : > { %4315 = vrcp.f32 %v2903_v25 }
0x1178   : > { %v2908_v27 = vpop.permute.xlu1 %2907 }
0x1179   : > { %v2913_v28 = vsel %vm1013_vm2, %v2908_v27, 0 }
0x117a   : > { %3889 = vmatpush3.bf16.msra.mxu1 %v2913_v28 }
0x117b   : > { %3160 = vmatprep.subr.bf16.mxu1 %v4277_v57 }
0x117f   : > { %v4316_v29 = vpop.eup %4315 }
0x1180   : > { %v2905_v30 = vmul.f32 %v4316_v29, %v4310_v50 }
0x1182   : > { %v2906_v31 = vpack.c.bf16 %v2905_v30, %v2905_v30 }
0x1184   : > { %3891 = vmatmul.mubr.msk.bf16.vlgmr.msra.gmra.mrb[16].mxu1 %vm996_vm7, %v2906_v31 }
0x1185   : > { %3192 = vmatprep.mubr.bf16.mxu1 %v4684_v1  ;;  %v4270_v1 = vld [vmem:[#allocation12 + $0x18] sm:$0xff]   ;;  %3161 = vmatpush1.bf16.msra.mxu1 %v4275_v56 }
0x1186   : > { %3901 = vmatpush3.bf16.msra.mxu0 %v4270_v1  ;;  %3162 = vmatprep.subr.bf16.mxu1 %v4280_v39 }
0x1187   : > { %3902 = vmatprep.subr.bf16.mxu0 %v4683_v12 }
0x1189   : > { %3163 = vmatpush1.bf16.msra.mxu1 %v4278_v58 }
0x118a   : > { %3903 = vmatpush3.bf16.msra.mxu0 %v4271_v51  ;;  %3164 = vmatprep.subr.bf16.mxu1 %v4283_v59 }
0x118b   : > { %3904 = vmatprep.subr.bf16.mxu0 %v4683_v12 }
0x118d   : > { %3165 = vmatpush1.bf16.msra.mxu1 %v4281_v62 }
0x118e   : > { %3905 = vmatpush3.bf16.msra.mxu0 %v4272_v53  ;;  %3166 = vmatprep.subr.bf16.mxu1 %v4286_v60 }
0x118f   : > { %3906 = vmatprep.subr.bf16.mxu0 %v4683_v12 }
0x1192   : > { %3907 = vmatpush3.bf16.msra.mxu0 %v4273_v54 }
0x1193   : > { %3908 = vmatprep.subr.bf16.mxu0 %v4683_v12  ;;  %v4284_v12 = vld [vmem:[#allocation14 + $0x30] ss:$8 sps:$4 sm:$0xff]  }
0x1194   : > { %3167 = vmatpush1.bf16.msra.mxu1 %v4284_v12 }
0x1195   : > { %3168 = vmatprep.subr.bf16.mxu1 %v4289_v9 }
0x1196   : > { %3909 = vmatpush3.bf16.msra.mxu0 %v4274_v55 }
0x1198   : > { %3169 = vmatpush1.bf16.msra.mxu1 %v4287_v10 }
0x1199   : > { %3170 = vmatprep.subr.bf16.mxu1 %v4292_v11 }
0x119c   : > { %3171 = vmatpush1.bf16.msra.mxu1 %v4290_v8 }
0x119d   : > { %3172 = vmatprep.subr.bf16.mxu1 %v4295_v4 }
0x11a0   : > { %3173 = vmatpush1.bf16.msra.mxu1 %v4293_v38 }
0x11a1   : > { %3174 = vmatprep.subr.bf16.mxu1 %v4298_v18 }
0x11a4   : > { %3175 = vmatpush1.bf16.msra.mxu1 %v4296_v43 }
0x11ae   : > { %v5590_v32 = vpop.f32.mrb[4].mxu1 }
0x11af   : > { %v3856_v33 = vpop.f32.mrb[5].mxu1 }
0x11b0   : > { %v2613_v7 = vpop.f32.mrb[6].mxu1 }
0x11b1   : > { %v3857_v34 = vpop.f32.mrb[7].mxu1 }
0x1223   : > { %v2725_v40 = vpop.f32.mrb[8].mxu1 }
0x1224   : > { %2956 = vrot.lane.b32.xlu0 %v2725_v40, %s4688_s28  ;;  %v3868_v3 = vpop.f32.mrb[9].mxu1 }
0x1225   : > { %v2728_v42 = vpop.f32.mrb[10].mxu1 }
0x1226   : > { %v3869_v45 = vpop.f32.mrb[11].mxu1 }
0x122b   : > { %v2837_v46 = vpop.f32.mrb[12].mxu1 }
0x122c   : > { %2960 = vrot.lane.b32.xlu1 %v2837_v46, %s4686_s17  ;;  %v3880_v47 = vpop.f32.mrb[13].mxu1 }
0x122d   : > { %v2840_v49 = vpop.f32.mrb[14].mxu1 }
0x122e   : > { %v3881_v52 = vpop.f32.mrb[15].mxu1 }
0x1257   : > { %v2949_v63 = vpop.f32.mrb[16].mxu1 }
0x1258   : > { %2964 = vrot.lane.b32.xlu0 %v2949_v63, %s4687_s9  ;;  %v3892_v61 = vpop.f32.mrb[17].mxu1 }
0x1259   : > { %v2952_v2 = vpop.f32.mrb[18].mxu1 }
0x125a   : > { %v3893_v5 = vpop.f32.mrb[19].mxu1 }
0x1296   : > { %v2957_v13 = vpop.permute.xlu0 %2956 }
0x1297   : > { %v2967_v15 = vsel %vm947_vm1, %v5590_v32, %v2957_v13 }
0x129e   : > { %v2961_v14 = vpop.permute.xlu1 %2960 }
0x129f   : > { %v2968_v50 = vsel %vm1409_vm8, %v2967_v15, %v2961_v14 }
0x12ca   : > { %v2965_v16 = vpop.permute.xlu0 %2964 }
0x12cb   : > { %v2969_v48 = vsel %vm1411_vm9, %v2968_v50, %v2965_v16 }
0x12cc   : > { %v2970_v17 = vpack.c.bf16 %v2969_v48, %v2969_v48 }
0x12ce   : > { %3911 = vmatmul.mubr.bf16.vlgmr.msra.gmra.mrb[20].mxu0 %v2970_v17 }
0x13a1   : > { %v3057_v20 = vpop.f32.mrb[20].mxu0 }
0x13a2   : > { %v3058_v21 = vadd.f32 %v3057_v20, %v2974_v19  ;;  %v3912_v22 = vpop.f32.mrb[21].mxu0 }
0x13a3   : > { %v3060_v26 = vpop.f32.mrb[22].mxu0 }
0x13a4   : > { %v3063_v0 = vpack.c.bf16 %v3058_v21, %v3058_v21  ;;  %v3913_v23 = vpop.f32.mrb[23].mxu0 }
0x13a6   : > { %3193 = vmatmul.mubr.bf16.vlgmr.msra.gmra.mrb[20].mxu1 %v3063_v0 }
0x1479   : > { %v3194_v24 = vpop.f32.mrb[20].mxu1 }
0x147a   : > { %3201 = vst [vmem:[%s5160_s14] sm:$0xff] %v3194_v24  ;;  %v3196_v25 = vpop.f32.mrb[21].mxu1 }
0x147b   : > { %3202 = vst [vmem:[%s5160_s14 + $0x8] sm:$0xff] %v3196_v25  ;;  %v3198_v27 = vpop.f32.mrb[22].mxu1 }
0x147c   : > { %v3199_v28 = vpop.f32.mrb[23].mxu1 }
0x147d PF: > { %s5776_s2 = sld [smem:[#allocation26_spill]]  ;;  %s5777_s20 = sld [smem:[#allocation23_spill]] }
0x147e   : > { %s5778_s15 = sld [smem:[#allocation29_spill]]  ;;  %s5779_s8 = sld [smem:[#allocation42_spill]] }
0x147f   : > { %s3218_s11 = sshll.u32 %s5160_s14, 4  ;;  %s4690_s29 = smov [#allocation15]   ;;  %s3219_s11 = int_to_ptr.vmem [resolvable:$true] %s3218_s11 }
0x1480   : > { %s4521_s7 = scalar_lea.vmem %s3219_s11, 256  ;;  %s4525_s26 = sshll.u32 %s4690_s29, 4  ;;  %s4526_s26 = int_to_ptr.vmem [resolvable:$false] %s4525_s26 }
0x1481   : > { %p4522_p12 = scmp.ne.s32.totalorder %s3219_s11, %s4521_s7  ;;  %s4527_s13 = scalar_lea.vmem %s4526_s26, 512 }
0x1482   : > { %p4528_p9 = scmp.lt.s32.totalorder %s3219_s11, %s4526_s26  ;;  %p4529_p1 = scmp.lt.s32.totalorder %s4527_s13, %s4521_s7 }
0x1483   : > { %s3625_s30 = sshll.u32 %s5776_s2, 8  ;;  %s5780_s4 = sand.u32 1, %s5777_s20  }
0x1484   : > { %s5615_s12 = scalar_lea.hbm %s5779_s8, %s3625_s30  ;;  %s3204_s1 = scalar_lea.sflag [#allocation5], %s5780_s4 }
0x1485   : > { %p5781_p11 = scmp.ne.s32.totalorder %s5778_s15, 0  ;;  %p4530_p13 = por %p4529_p1, %p4528_p9 }
0x1487   : > { %p4523_p3 = pnand %p4522_p12, %p5781_p11 }
0x1489   : > { %p4524_p2 = pneg %p4523_p3 }
0x148b   : > { %p4531_p4 = pnand %p4530_p13, %p4524_p2 }
0x148d   : > { %4534 = shalt.err (!%p4531_p4)
}
0x148e   : > { %s4535_s14 = scalar_lea.hbm %s5615_s12, 256  ;;  %s4539_s24 = scalar_lea.hbm %s5779_s8, 512 }
0x148f   : > { %p4536_p7 = scmp.ne.s32.totalorder %s5615_s12, %s4535_s14  ;;  %p4540_p10 = scmp.lt.u32.totalorder %s5615_s12, %s5779_s8 }
0x1490   : > { %p4541_p0 = scmp.lt.u32.totalorder %s4539_s24, %s4535_s14  ;;  %p4543_p12 = scmp.lt.u32.totalorder %s4535_s14, %s5615_s12 }
0x1491   : > { %p4537_p5 = pnand %p4536_p7, %p5781_p11 }
0x1492   : > { %p4542_p8 = por %p4541_p0, %p4540_p10 }
0x1493   : > { %p4538_p6 = pneg %p4537_p5 }
0x1494   : > { %p4544_p3 = por %p4543_p12, %p4542_p8 }
0x1496   : > { %p4545_p2 = pnand %p4544_p3, %p4538_p6 }
0x1498   : > { %4548 = shalt.err (!%p4545_p2)
}
0x1499   : > { %3937 = dma.vmem_to_hbm [thread:$0]  (%p5781_p11), %s3219_s11, 256, %s5615_s12, %s3204_s1  }
0x149a PF: > { %s5782_s28 = sld [smem:[#allocation22_spill]]  ;;  %s5783_s2 = sld [smem:[#allocation30_spill]] }
0x149b   : > { %p3973_p9 = scmp.ge.s32.totalorder %s4659_s27, 2 }
0x14a0   : > { %s3230_s20 = sand.u32 1, %s5782_s28   ;;  %p5784_p1 = scmp.ne.s32.totalorder %s5783_s2, 0 }
0x14a1   : > { %s3231_s30 = scalar_lea.sflag [#allocation5], %s3230_s20 }
0x14a2   : > { %p3963_p13 = pnand %p3973_p9, %p5784_p1 }
0x14a4   : > { %4614 = dma.done.wait (!%p3963_p13), %s3231_s30, 256  }
0x14a5   : > { %4616 = vsyncadd (!%p3963_p13), %s3231_s30, 4294967040  ;;  %s34_s27 = sadd.s32 1, %s4659_s27   ;;  %s5785_s17 = sld [smem:[#allocation23_spill]] }
0x14a6   : > { %p31_p4 = scmp.ge.s32.totalorder %s34_s27, 6   ;;  %s5786_s16 = sld [smem:[#allocation34_spill]] }
0x14a7   : > { %s5787_s15 = sld [smem:[#allocation24_spill]]  ;;  %s5788_s22 = sld [smem:[#allocation33_spill]] }
0x14a8   : > { %s5789_s24 = sld [smem:[#allocation27_spill]]  ;;  %s5790_s12 = sld [smem:[#allocation31_spill]] }
0x14a9   : > { %s5791_s26 = sld [smem:[#allocation32_spill]]  ;;  %s5792_s18 = smov %s4627_s19 }
0x14aa   : > { %s5794_s20 = smov %s4635_s21  ;;  %s5796_s23 = smov %s4651_s25 }
0x14ab   :  { %33 = sbr.rel (!%p31_p4) target bundleno = 23 (0x17), region = 175 }
0x14ac   : > { %s5793_s19 = smov %s5786_s16 }
0x14ad   : > { %s5795_s21 = smov %s5787_s15 }
0x14ae   : > { %s5797_s25 = smov %s5790_s12 }
0x14b2   :  { %3236 = vsyncpa [#allocation4], 1 }
0x14b3   :  { %3238 = vsyncpa [#allocation4 + $0x1], 1 }
0x14b4   :  { %3239 = vsyncpa [#allocation7], 1 }
0x14b5   :  { %3241 = vsyncpa [#allocation7 + $0x1], 1 }
0x14b6   :  { %3242 = vsyncpa [#allocation10], 1 }
0x14b7   :  { %3244 = vsyncpa [#allocation10 + $0x1], 1 }
0x14b8   :  { %3245 = vsyncpa [#allocation13], 1 }
0x14b9   :  { %3246 = vsyncpa [#allocation5], 1 }
0x14ba   :  { %3248 = vsyncpa [#allocation5 + $0x1], 1 }

</bundles_post_ra>
